<compile_context>
chip_gen: v7x
topology: tpu7x:2x2x1
jax: 0.10.0
libtpu: 0.0.40
codegen_flags: <defaults>
</compile_context>

<pallas_src>
import functools

import jax
import jax.numpy as jnp
from jax import lax
from jax.experimental import pallas as pl
from jax.experimental.pallas import tpu as pltpu

HEADS = 4
NEG_SLOPE = 0.2      # GATConv default negative_slope
NEG_INF = -1e30


# --------------------------------------------------------------------------------------
# Fused Pallas kernel: both GAT layers (projection + attention + aggregation + ReLU)
# --------------------------------------------------------------------------------------
def gat_encoder_kernel(x_ref, adj_ref, ew_ref,
                       w1_ref, adst1_ref, asrc1_ref, ce1_ref, b1_ref,
                       w2_ref, adst2_ref, asrc2_ref, ce2_ref, b2_ref,
                       out_ref, *, heads, f_out):
    n = x_ref.shape[0]
    adj = adj_ref[...]                                  # (N_dst, N_src) 1/0 mask (self-loops in)
    ew = ew_ref[...]                                    # (N_dst, N_src) edge weights
    # Additive mask built once (hoisted), reused across both layers and all heads.
    neg_mask = jnp.where(adj > 0, 0.0, NEG_INF)
    heads_f = float(heads)

    def one_layer(x, w_ref, adst_ref, asrc_ref, ce_ref, b_ref):
        # Projection on the MXU: (N, F_in) @ (F_in, H*F_out)
        xp = jnp.dot(x, w_ref[...], preferred_element_type=jnp.float32)
        # Batched alpha projections: 2 matmuls with K = H*F_out instead of 2*H tiny dots.
        a_dst_all = jnp.dot(xp, adst_ref[...], preferred_element_type=jnp.float32)   # (N, H)
        a_src_all = lax.dot_general(asrc_ref[...], xp, (((1,), (1,)), ((), ())),
                                    preferred_element_type=jnp.float32)              # (H, N)

        acc = jnp.zeros((n, f_out), jnp.float32)
        for h in range(heads):                          # static unroll, heads is small
            xh = xp[:, h * f_out:(h + 1) * f_out]       # (N, F_out)
            e = a_dst_all[:, h:h + 1] + a_src_all[h:h + 1, :] + ew * ce_ref[h]
            e = jnp.where(e > 0, e, NEG_SLOPE * e)      # LeakyReLU(0.2)
            e = e + neg_mask                            # non-edges -> ~ -1e30
            e_max = jnp.max(e, axis=-1, keepdims=True)
            p = jnp.exp(e - e_max)                      # masked entries underflow to exactly 0
            denom = jnp.sum(p, axis=-1, keepdims=True)  # (N, 1), >= 1 (self-loop)
            # Deferred normalization: aggregate unnormalized, then scale by 1/(denom*H).
            agg = jnp.dot(p, xh, preferred_element_type=jnp.float32)        # (N, F_out) MXU
            acc = acc + agg * pl.reciprocal(denom * heads_f, approx=True)
        # bias + fused encoder ReLU (head mean already folded into the reciprocal)
        return jnp.maximum(acc + b_ref[...], 0.0)

    h1 = one_layer(x_ref[...], w1_ref, adst1_ref, asrc1_ref, ce1_ref, b1_ref)
    # dropout: eval-mode identity
    out_ref[...] = one_layer(h1, w2_ref, adst2_ref, asrc2_ref, ce2_ref, b2_ref)


def gat_encoder_pallas(x, adj, ew, p1, p2):
    n = x.shape[0]
    heads, f_out = p1["att_src"].shape

    kernel = functools.partial(gat_encoder_kernel, heads=heads, f_out=f_out)
    vmem = pl.BlockSpec(memory_space=pltpu.MemorySpace.VMEM)
    smem = pl.BlockSpec(memory_space=pltpu.MemorySpace.SMEM)

    args = (x, adj, ew,
            p1["w"], p1["a_dst_mat"], p1["a_src_mat"], p1["c_edge"], p1["bias"],
            p2["w"], p2["a_dst_mat"], p2["a_src_mat"], p2["c_edge"], p2["bias"])
    in_specs = [vmem, vmem, vmem,
                vmem, vmem, vmem, smem, vmem,
                vmem, vmem, vmem, smem, vmem]

    # Advisory cost estimate so XLA schedules the surrounding densification ops well.
    def layer_cost(f_in):
        fl = 2 * n * f_in * heads * f_out            # projection
        fl += 2 * n * heads * f_out * 2 * heads      # alpha matmuls
        fl += 2 * heads * n * n * f_out              # aggregation matmuls
        fl += 10 * heads * n * n                     # softmax elementwise
        tr = heads * n * n + heads * n               # exp + reciprocal
        return fl, tr
    fl1, tr1 = layer_cost(x.shape[1])
    fl2, tr2 = layer_cost(f_out)
    bytes_accessed = sum(int(a.size) * 4 for a in args) + n * f_out * 4

    return pl.pallas_call(
        kernel,
        out_shape=jax.ShapeDtypeStruct((n, f_out), jnp.float32),
        in_specs=in_specs,
        out_specs=vmem,
        compiler_params=pltpu.CompilerParams(vmem_limit_bytes=32 << 20),
        cost_estimate=pl.CostEstimate(flops=fl1 + fl2,
                                      transcendentals=tr1 + tr2,
                                      bytes_accessed=bytes_accessed),
    )(*args)


# --------------------------------------------------------------------------------------
# Glue: parameter init, dense graph construction, pure-JAX reference
# --------------------------------------------------------------------------------------
def _block_diag_att(att, heads, f_out):
    """(H, F_out) -> (H*F_out, H) block-diagonal: column h holds att[h] in rows h*F_out:(h+1)*F_out."""
    return (jnp.eye(heads, dtype=jnp.float32)[:, None, :] * att[:, :, None]).reshape(
        heads * f_out, heads)


def init_gat_params(key, f_in, f_out, heads):
    ks = jax.random.split(key, 6)
    scale = 1.0 / jnp.sqrt(jnp.float32(f_in))
    w = jax.random.normal(ks[0], (f_in, heads * f_out), jnp.float32) * scale
    att_src = jax.random.normal(ks[1], (heads, f_out), jnp.float32) * 0.1
    att_dst = jax.random.normal(ks[2], (heads, f_out), jnp.float32) * 0.1
    att_edge = jax.random.normal(ks[3], (heads, f_out), jnp.float32) * 0.1
    w_edge = jax.random.normal(ks[4], (1, heads * f_out), jnp.float32)
    bias = jax.random.normal(ks[5], (1, f_out), jnp.float32) * 0.1
    # lin_edge(edge_attr) . att_edge collapses (edge_dim=1) to edge_weight * c[h]
    c_edge = jnp.sum(w_edge.reshape(heads, f_out) * att_edge, axis=-1)        # (H,)
    # Host-side block matrices used to batch the per-head alpha projections.
    a_dst_mat = _block_diag_att(att_dst, heads, f_out)                        # (H*F_out, H)
    a_src_mat = _block_diag_att(att_src, heads, f_out).T                      # (H, H*F_out)
    return dict(w=w, att_src=att_src, att_dst=att_dst, c_edge=c_edge,
                a_dst_mat=a_dst_mat, a_src_mat=a_src_mat, bias=bias)


def build_dense_graph(edge_index, edge_weight, n):
    """Densify (2, E) edge list: remove self-loops, add self-loops with mean incoming attr."""
    src = edge_index[0]
    dst = edge_index[1]
    w = edge_weight[:, 0]
    eye = jnp.eye(n, dtype=jnp.float32)
    adj = jnp.zeros((n, n), jnp.float32).at[dst, src].set(1.0)
    ew = jnp.zeros((n, n), jnp.float32).at[dst, src].set(w)
    adj = adj * (1.0 - eye)                      # remove_self_loops
    ew = ew * (1.0 - eye)
    in_deg = jnp.sum(adj, axis=1)
    self_w = jnp.sum(ew, axis=1) / jnp.maximum(in_deg, 1.0)   # scatter-mean fill_value
    adj = adj + eye
    ew = ew + eye * self_w[:, None]
    return adj, ew


def gat_layer_ref(x, w, att_src, att_dst, c_edge, adj, ew, bias):
    heads, f_out = att_src.shape
    xp = x @ w
    out = 0.0
    for h in range(heads):
        xh = xp[:, h * f_out:(h + 1) * f_out]
        a_src = jnp.sum(xh * att_src[h], axis=-1)
        a_dst = jnp.sum(xh * att_dst[h], axis=-1)
        e = a_dst[:, None] + a_src[None, :] + ew * c_edge[h]
        e = jnp.where(e > 0, e, NEG_SLOPE * e)
        e = jnp.where(adj > 0, e, -jnp.inf)
        attn = jax.nn.softmax(e, axis=-1)
        out = out + attn @ xh
    return jnp.maximum(out / heads + bias, 0.0)


def gat_encoder_ref(x, adj, ew, p1, p2):
    h = gat_layer_ref(x, p1["w"], p1["att_src"], p1["att_dst"], p1["c_edge"], adj, ew, p1["bias"])
    h = gat_layer_ref(h, p2["w"], p2["att_src"], p2["att_dst"], p2["c_edge"], adj, ew, p2["bias"])
    return h


if __name__ == "__main__":
    N = 16            # number of graph nodes
    F_IN = 4          # in_channels
    F_OUT = 32        # out_channels

    key = jax.random.PRNGKey(0)
    kx, kw, kp1, kp2 = jax.random.split(key, 4)

    # node features
    x = jax.random.normal(kx, (N, F_IN), jnp.float32)

    # bidirectional ring graph: E = 2*N edges, with scalar edge weights (edge_dim=1)
    src = jnp.concatenate([jnp.arange(N), (jnp.arange(N) + 1) % N]).astype(jnp.int32)
    dst = jnp.concatenate([(jnp.arange(N) + 1) % N, jnp.arange(N)]).astype(jnp.int32)
    edge_index = jnp.stack([src, dst], axis=0)                    # (2, 32)
    edge_weight = jax.random.uniform(kw, (edge_index.shape[1], 1), jnp.float32)

    params1 = init_gat_params(kp1, F_IN, F_OUT, HEADS)
    params2 = init_gat_params(kp2, F_OUT, F_OUT, HEADS)

    adj, ew = build_dense_graph(edge_index, edge_weight, N)

    out = gat_encoder_pallas(x, adj, ew, params1, params2)
    out = jax.block_until_ready(out)

    ref = gat_encoder_ref(x, adj, ew, params1, params2)
    assert out.shape == (N, F_OUT)
    # tolerance covers the approx (EUP) reciprocal in the deferred softmax normalization
    assert jnp.allclose(out, ref, atol=2e-3, rtol=2e-3), "Pallas kernel mismatch vs JAX reference"

    print("KERNEL_OK")
</pallas_src>

<mosaic_0001>
module attributes {stable_mosaic.version = 11 : i64} {
  func.func @gat_encoder_kernel(%arg0: memref<16x4xf32, #tpu.memory_space<vmem>>, %arg1: memref<16x16xf32, #tpu.memory_space<vmem>>, %arg2: memref<16x16xf32, #tpu.memory_space<vmem>>, %arg3: memref<4x128xf32, #tpu.memory_space<vmem>>, %arg4: memref<128x4xf32, #tpu.memory_space<vmem>>, %arg5: memref<4x128xf32, #tpu.memory_space<vmem>>, %arg6: memref<4xf32, #tpu.memory_space<smem>>, %arg7: memref<1x32xf32, #tpu.memory_space<vmem>>, %arg8: memref<32x128xf32, #tpu.memory_space<vmem>>, %arg9: memref<128x4xf32, #tpu.memory_space<vmem>>, %arg10: memref<4x128xf32, #tpu.memory_space<vmem>>, %arg11: memref<4xf32, #tpu.memory_space<smem>>, %arg12: memref<1x32xf32, #tpu.memory_space<vmem>>, %arg13: memref<16x32xf32, #tpu.memory_space<vmem>>) attributes {dimension_semantics = [], scalar_prefetch = 0 : i64, scratch_operands = 0 : i64, tpu.core_type = #tpu.core_type<tc>} {
    %c0 = arith.constant 0 : index
    %c0_0 = arith.constant 0 : index
    %0 = vector.load %arg1[%c0, %c0_0] : memref<16x16xf32, #tpu.memory_space<vmem>>, vector<16x16xf32>
    %c0_1 = arith.constant 0 : index
    %c0_2 = arith.constant 0 : index
    %1 = vector.load %arg2[%c0_1, %c0_2] : memref<16x16xf32, #tpu.memory_space<vmem>>, vector<16x16xf32>
    %cst = arith.constant 0.000000e+00 : f32
    %2 = vector.broadcast %cst : f32 to vector<16x16xf32>
    %3 = arith.cmpf ogt, %0, %2 : vector<16x16xf32>
    %cst_3 = arith.constant 0.000000e+00 : f32
    %cst_4 = arith.constant -1.000000e+30 : f32
    %4 = vector.broadcast %cst_3 : f32 to vector<16x16xf32>
    %5 = vector.broadcast %cst_4 : f32 to vector<16x16xf32>
    %6 = arith.select %3, %4, %5 : vector<16x16xi1>, vector<16x16xf32>
    %c0_5 = arith.constant 0 : index
    %c0_6 = arith.constant 0 : index
    %7 = vector.load %arg0[%c0_5, %c0_6] : memref<16x4xf32, #tpu.memory_space<vmem>>, vector<16x4xf32>
    %c0_7 = arith.constant 0 : index
    %c0_8 = arith.constant 0 : index
    %8 = vector.load %arg3[%c0_7, %c0_8] : memref<4x128xf32, #tpu.memory_space<vmem>>, vector<4x128xf32>
    %cst_9 = arith.constant dense<0.000000e+00> : vector<16x128xf32>
    %9 = tpu.matmul %7, %8, %cst_9 {dimension_numbers = #tpu.dot_dimension_numbers<[1], [0], [0], [1], [0, 0, 1, 1], [], []>} : vector<16x4xf32>, vector<4x128xf32>, vector<16x128xf32> -> vector<16x128xf32>
    %c0_10 = arith.constant 0 : index
    %c0_11 = arith.constant 0 : index
    %10 = vector.load %arg4[%c0_10, %c0_11] : memref<128x4xf32, #tpu.memory_space<vmem>>, vector<128x4xf32>
    %cst_12 = arith.constant dense<0.000000e+00> : vector<16x4xf32>
    %11 = tpu.matmul %9, %10, %cst_12 {dimension_numbers = #tpu.dot_dimension_numbers<[1], [0], [0], [1], [0, 0, 1, 1], [], []>} : vector<16x128xf32>, vector<128x4xf32>, vector<16x4xf32> -> vector<16x4xf32>
    %c0_13 = arith.constant 0 : index
    %c0_14 = arith.constant 0 : index
    %12 = vector.load %arg5[%c0_13, %c0_14] : memref<4x128xf32, #tpu.memory_space<vmem>>, vector<4x128xf32>
    %cst_15 = arith.constant dense<0.000000e+00> : vector<4x16xf32>
    %13 = tpu.matmul %12, %9, %cst_15 {dimension_numbers = #tpu.dot_dimension_numbers<[1], [1], [0], [0], [0, 0, 1, 0], [], []>} : vector<4x128xf32>, vector<16x128xf32>, vector<4x16xf32> -> vector<4x16xf32>
    %cst_16 = arith.constant 0.000000e+00 : f32
    %14 = vector.broadcast %cst_16 : f32 to vector<16x32xf32>
    %15 = vector.extract_strided_slice %9 {offsets = [0, 0], sizes = [16, 32], strides = [1, 1]} : vector<16x128xf32> to vector<16x32xf32>
    %16 = vector.extract_strided_slice %11 {offsets = [0, 0], sizes = [16, 1], strides = [1, 1]} : vector<16x4xf32> to vector<16x1xf32>
    %17 = vector.extract_strided_slice %13 {offsets = [0, 0], sizes = [1, 16], strides = [1, 1]} : vector<4x16xf32> to vector<1x16xf32>
    %18 = vector.broadcast %16 : vector<16x1xf32> to vector<16x16xf32>
    %19 = vector.broadcast %17 : vector<1x16xf32> to vector<16x16xf32>
    %20 = arith.addf %18, %19 : vector<16x16xf32>
    %c0_17 = arith.constant 0 : index
    %21 = memref.load %arg6[%c0_17] : memref<4xf32, #tpu.memory_space<smem>>
    %22 = vector.broadcast %21 : f32 to vector<16x16xf32>
    %23 = arith.mulf %1, %22 : vector<16x16xf32>
    %24 = arith.addf %20, %23 : vector<16x16xf32>
    %cst_18 = arith.constant 0.000000e+00 : f32
    %25 = vector.broadcast %cst_18 : f32 to vector<16x16xf32>
    %26 = arith.cmpf ogt, %24, %25 : vector<16x16xf32>
    %cst_19 = arith.constant 2.000000e-01 : f32
    %27 = vector.broadcast %cst_19 : f32 to vector<16x16xf32>
    %28 = arith.mulf %27, %24 : vector<16x16xf32>
    %29 = arith.select %26, %24, %28 : vector<16x16xi1>, vector<16x16xf32>
    %30 = arith.addf %29, %6 : vector<16x16xf32>
    %cst_20 = arith.constant dense<0xFF800000> : vector<16xf32>
    %31 = vector.multi_reduction <maximumf>, %30, %cst_20 [1] : vector<16x16xf32> to vector<16xf32>
    %32 = vector.shape_cast %31 : vector<16xf32> to vector<16x1xf32>
    %33 = vector.broadcast %32 : vector<16x1xf32> to vector<16x16xf32>
    %34 = arith.subf %30, %33 : vector<16x16xf32>
    %35 = math.exp %34 : vector<16x16xf32>
    %cst_21 = arith.constant dense<0.000000e+00> : vector<16xf32>
    %36 = vector.multi_reduction <add>, %35, %cst_21 [1] : vector<16x16xf32> to vector<16xf32>
    %37 = vector.shape_cast %36 : vector<16xf32> to vector<16x1xf32>
    %cst_22 = arith.constant dense<0.000000e+00> : vector<16x32xf32>
    %38 = tpu.matmul %35, %15, %cst_22 {dimension_numbers = #tpu.dot_dimension_numbers<[1], [0], [0], [1], [0, 0, 1, 1], [], []>} : vector<16x16xf32>, vector<16x32xf32>, vector<16x32xf32> -> vector<16x32xf32>
    %cst_23 = arith.constant 4.000000e+00 : f32
    %39 = vector.broadcast %cst_23 : f32 to vector<16x1xf32>
    %40 = arith.mulf %37, %39 : vector<16x1xf32>
    %41 = tpu.reciprocal %40 {approx = true} : vector<16x1xf32> -> vector<16x1xf32>
    %42 = vector.broadcast %41 : vector<16x1xf32> to vector<16x32xf32>
    %43 = arith.mulf %38, %42 : vector<16x32xf32>
    %44 = arith.addf %14, %43 : vector<16x32xf32>
    %45 = vector.extract_strided_slice %9 {offsets = [0, 32], sizes = [16, 32], strides = [1, 1]} : vector<16x128xf32> to vector<16x32xf32>
    %46 = vector.extract_strided_slice %11 {offsets = [0, 1], sizes = [16, 1], strides = [1, 1]} : vector<16x4xf32> to vector<16x1xf32>
    %47 = vector.extract_strided_slice %13 {offsets = [1, 0], sizes = [1, 16], strides = [1, 1]} : vector<4x16xf32> to vector<1x16xf32>
    %48 = vector.broadcast %46 : vector<16x1xf32> to vector<16x16xf32>
    %49 = vector.broadcast %47 : vector<1x16xf32> to vector<16x16xf32>
    %50 = arith.addf %48, %49 : vector<16x16xf32>
    %c1 = arith.constant 1 : index
    %51 = memref.load %arg6[%c1] : memref<4xf32, #tpu.memory_space<smem>>
    %52 = vector.broadcast %51 : f32 to vector<16x16xf32>
    %53 = arith.mulf %1, %52 : vector<16x16xf32>
    %54 = arith.addf %50, %53 : vector<16x16xf32>
    %cst_24 = arith.constant 0.000000e+00 : f32
    %55 = vector.broadcast %cst_24 : f32 to vector<16x16xf32>
    %56 = arith.cmpf ogt, %54, %55 : vector<16x16xf32>
    %cst_25 = arith.constant 2.000000e-01 : f32
    %57 = vector.broadcast %cst_25 : f32 to vector<16x16xf32>
    %58 = arith.mulf %57, %54 : vector<16x16xf32>
    %59 = arith.select %56, %54, %58 : vector<16x16xi1>, vector<16x16xf32>
    %60 = arith.addf %59, %6 : vector<16x16xf32>
    %cst_26 = arith.constant dense<0xFF800000> : vector<16xf32>
    %61 = vector.multi_reduction <maximumf>, %60, %cst_26 [1] : vector<16x16xf32> to vector<16xf32>
    %62 = vector.shape_cast %61 : vector<16xf32> to vector<16x1xf32>
    %63 = vector.broadcast %62 : vector<16x1xf32> to vector<16x16xf32>
    %64 = arith.subf %60, %63 : vector<16x16xf32>
    %65 = math.exp %64 : vector<16x16xf32>
    %cst_27 = arith.constant dense<0.000000e+00> : vector<16xf32>
    %66 = vector.multi_reduction <add>, %65, %cst_27 [1] : vector<16x16xf32> to vector<16xf32>
    %67 = vector.shape_cast %66 : vector<16xf32> to vector<16x1xf32>
    %cst_28 = arith.constant dense<0.000000e+00> : vector<16x32xf32>
    %68 = tpu.matmul %65, %45, %cst_28 {dimension_numbers = #tpu.dot_dimension_numbers<[1], [0], [0], [1], [0, 0, 1, 1], [], []>} : vector<16x16xf32>, vector<16x32xf32>, vector<16x32xf32> -> vector<16x32xf32>
    %cst_29 = arith.constant 4.000000e+00 : f32
    %69 = vector.broadcast %cst_29 : f32 to vector<16x1xf32>
    %70 = arith.mulf %67, %69 : vector<16x1xf32>
    %71 = tpu.reciprocal %70 {approx = true} : vector<16x1xf32> -> vector<16x1xf32>
    %72 = vector.broadcast %71 : vector<16x1xf32> to vector<16x32xf32>
    %73 = arith.mulf %68, %72 : vector<16x32xf32>
    %74 = arith.addf %44, %73 : vector<16x32xf32>
    %75 = vector.extract_strided_slice %9 {offsets = [0, 64], sizes = [16, 32], strides = [1, 1]} : vector<16x128xf32> to vector<16x32xf32>
    %76 = vector.extract_strided_slice %11 {offsets = [0, 2], sizes = [16, 1], strides = [1, 1]} : vector<16x4xf32> to vector<16x1xf32>
    %77 = vector.extract_strided_slice %13 {offsets = [2, 0], sizes = [1, 16], strides = [1, 1]} : vector<4x16xf32> to vector<1x16xf32>
    %78 = vector.broadcast %76 : vector<16x1xf32> to vector<16x16xf32>
    %79 = vector.broadcast %77 : vector<1x16xf32> to vector<16x16xf32>
    %80 = arith.addf %78, %79 : vector<16x16xf32>
    %c2 = arith.constant 2 : index
    %81 = memref.load %arg6[%c2] : memref<4xf32, #tpu.memory_space<smem>>
    %82 = vector.broadcast %81 : f32 to vector<16x16xf32>
    %83 = arith.mulf %1, %82 : vector<16x16xf32>
    %84 = arith.addf %80, %83 : vector<16x16xf32>
    %cst_30 = arith.constant 0.000000e+00 : f32
    %85 = vector.broadcast %cst_30 : f32 to vector<16x16xf32>
    %86 = arith.cmpf ogt, %84, %85 : vector<16x16xf32>
    %cst_31 = arith.constant 2.000000e-01 : f32
    %87 = vector.broadcast %cst_31 : f32 to vector<16x16xf32>
    %88 = arith.mulf %87, %84 : vector<16x16xf32>
    %89 = arith.select %86, %84, %88 : vector<16x16xi1>, vector<16x16xf32>
    %90 = arith.addf %89, %6 : vector<16x16xf32>
    %cst_32 = arith.constant dense<0xFF800000> : vector<16xf32>
    %91 = vector.multi_reduction <maximumf>, %90, %cst_32 [1] : vector<16x16xf32> to vector<16xf32>
    %92 = vector.shape_cast %91 : vector<16xf32> to vector<16x1xf32>
    %93 = vector.broadcast %92 : vector<16x1xf32> to vector<16x16xf32>
    %94 = arith.subf %90, %93 : vector<16x16xf32>
    %95 = math.exp %94 : vector<16x16xf32>
    %cst_33 = arith.constant dense<0.000000e+00> : vector<16xf32>
    %96 = vector.multi_reduction <add>, %95, %cst_33 [1] : vector<16x16xf32> to vector<16xf32>
    %97 = vector.shape_cast %96 : vector<16xf32> to vector<16x1xf32>
    %cst_34 = arith.constant dense<0.000000e+00> : vector<16x32xf32>
    %98 = tpu.matmul %95, %75, %cst_34 {dimension_numbers = #tpu.dot_dimension_numbers<[1], [0], [0], [1], [0, 0, 1, 1], [], []>} : vector<16x16xf32>, vector<16x32xf32>, vector<16x32xf32> -> vector<16x32xf32>
    %cst_35 = arith.constant 4.000000e+00 : f32
    %99 = vector.broadcast %cst_35 : f32 to vector<16x1xf32>
    %100 = arith.mulf %97, %99 : vector<16x1xf32>
    %101 = tpu.reciprocal %100 {approx = true} : vector<16x1xf32> -> vector<16x1xf32>
    %102 = vector.broadcast %101 : vector<16x1xf32> to vector<16x32xf32>
    %103 = arith.mulf %98, %102 : vector<16x32xf32>
    %104 = arith.addf %74, %103 : vector<16x32xf32>
    %105 = vector.extract_strided_slice %9 {offsets = [0, 96], sizes = [16, 32], strides = [1, 1]} : vector<16x128xf32> to vector<16x32xf32>
    %106 = vector.extract_strided_slice %11 {offsets = [0, 3], sizes = [16, 1], strides = [1, 1]} : vector<16x4xf32> to vector<16x1xf32>
    %107 = vector.extract_strided_slice %13 {offsets = [3, 0], sizes = [1, 16], strides = [1, 1]} : vector<4x16xf32> to vector<1x16xf32>
    %108 = vector.broadcast %106 : vector<16x1xf32> to vector<16x16xf32>
    %109 = vector.broadcast %107 : vector<1x16xf32> to vector<16x16xf32>
    %110 = arith.addf %108, %109 : vector<16x16xf32>
    %c3 = arith.constant 3 : index
    %111 = memref.load %arg6[%c3] : memref<4xf32, #tpu.memory_space<smem>>
    %112 = vector.broadcast %111 : f32 to vector<16x16xf32>
    %113 = arith.mulf %1, %112 : vector<16x16xf32>
    %114 = arith.addf %110, %113 : vector<16x16xf32>
    %cst_36 = arith.constant 0.000000e+00 : f32
    %115 = vector.broadcast %cst_36 : f32 to vector<16x16xf32>
    %116 = arith.cmpf ogt, %114, %115 : vector<16x16xf32>
    %cst_37 = arith.constant 2.000000e-01 : f32
    %117 = vector.broadcast %cst_37 : f32 to vector<16x16xf32>
    %118 = arith.mulf %117, %114 : vector<16x16xf32>
    %119 = arith.select %116, %114, %118 : vector<16x16xi1>, vector<16x16xf32>
    %120 = arith.addf %119, %6 : vector<16x16xf32>
    %cst_38 = arith.constant dense<0xFF800000> : vector<16xf32>
    %121 = vector.multi_reduction <maximumf>, %120, %cst_38 [1] : vector<16x16xf32> to vector<16xf32>
    %122 = vector.shape_cast %121 : vector<16xf32> to vector<16x1xf32>
    %123 = vector.broadcast %122 : vector<16x1xf32> to vector<16x16xf32>
    %124 = arith.subf %120, %123 : vector<16x16xf32>
    %125 = math.exp %124 : vector<16x16xf32>
    %cst_39 = arith.constant dense<0.000000e+00> : vector<16xf32>
    %126 = vector.multi_reduction <add>, %125, %cst_39 [1] : vector<16x16xf32> to vector<16xf32>
    %127 = vector.shape_cast %126 : vector<16xf32> to vector<16x1xf32>
    %cst_40 = arith.constant dense<0.000000e+00> : vector<16x32xf32>
    %128 = tpu.matmul %125, %105, %cst_40 {dimension_numbers = #tpu.dot_dimension_numbers<[1], [0], [0], [1], [0, 0, 1, 1], [], []>} : vector<16x16xf32>, vector<16x32xf32>, vector<16x32xf32> -> vector<16x32xf32>
    %cst_41 = arith.constant 4.000000e+00 : f32
    %129 = vector.broadcast %cst_41 : f32 to vector<16x1xf32>
    %130 = arith.mulf %127, %129 : vector<16x1xf32>
    %131 = tpu.reciprocal %130 {approx = true} : vector<16x1xf32> -> vector<16x1xf32>
    %132 = vector.broadcast %131 : vector<16x1xf32> to vector<16x32xf32>
    %133 = arith.mulf %128, %132 : vector<16x32xf32>
    %134 = arith.addf %104, %133 : vector<16x32xf32>
    %c0_42 = arith.constant 0 : index
    %c0_43 = arith.constant 0 : index
    %135 = vector.load %arg7[%c0_42, %c0_43] : memref<1x32xf32, #tpu.memory_space<vmem>>, vector<1x32xf32>
    %136 = vector.broadcast %135 : vector<1x32xf32> to vector<16x32xf32>
    %137 = arith.addf %134, %136 : vector<16x32xf32>
    %cst_44 = arith.constant 0.000000e+00 : f32
    %138 = vector.broadcast %cst_44 : f32 to vector<16x32xf32>
    %139 = arith.maximumf %137, %138 : vector<16x32xf32>
    %c0_45 = arith.constant 0 : index
    %c0_46 = arith.constant 0 : index
    %140 = vector.load %arg8[%c0_45, %c0_46] : memref<32x128xf32, #tpu.memory_space<vmem>>, vector<32x128xf32>
    %cst_47 = arith.constant dense<0.000000e+00> : vector<16x128xf32>
    %141 = tpu.matmul %139, %140, %cst_47 {dimension_numbers = #tpu.dot_dimension_numbers<[1], [0], [0], [1], [0, 0, 1, 1], [], []>} : vector<16x32xf32>, vector<32x128xf32>, vector<16x128xf32> -> vector<16x128xf32>
    %c0_48 = arith.constant 0 : index
    %c0_49 = arith.constant 0 : index
    %142 = vector.load %arg9[%c0_48, %c0_49] : memref<128x4xf32, #tpu.memory_space<vmem>>, vector<128x4xf32>
    %cst_50 = arith.constant dense<0.000000e+00> : vector<16x4xf32>
    %143 = tpu.matmul %141, %142, %cst_50 {dimension_numbers = #tpu.dot_dimension_numbers<[1], [0], [0], [1], [0, 0, 1, 1], [], []>} : vector<16x128xf32>, vector<128x4xf32>, vector<16x4xf32> -> vector<16x4xf32>
    %c0_51 = arith.constant 0 : index
    %c0_52 = arith.constant 0 : index
    %144 = vector.load %arg10[%c0_51, %c0_52] : memref<4x128xf32, #tpu.memory_space<vmem>>, vector<4x128xf32>
    %cst_53 = arith.constant dense<0.000000e+00> : vector<4x16xf32>
    %145 = tpu.matmul %144, %141, %cst_53 {dimension_numbers = #tpu.dot_dimension_numbers<[1], [1], [0], [0], [0, 0, 1, 0], [], []>} : vector<4x128xf32>, vector<16x128xf32>, vector<4x16xf32> -> vector<4x16xf32>
    %cst_54 = arith.constant 0.000000e+00 : f32
    %146 = vector.broadcast %cst_54 : f32 to vector<16x32xf32>
    %147 = vector.extract_strided_slice %141 {offsets = [0, 0], sizes = [16, 32], strides = [1, 1]} : vector<16x128xf32> to vector<16x32xf32>
    %148 = vector.extract_strided_slice %143 {offsets = [0, 0], sizes = [16, 1], strides = [1, 1]} : vector<16x4xf32> to vector<16x1xf32>
    %149 = vector.extract_strided_slice %145 {offsets = [0, 0], sizes = [1, 16], strides = [1, 1]} : vector<4x16xf32> to vector<1x16xf32>
    %150 = vector.broadcast %148 : vector<16x1xf32> to vector<16x16xf32>
    %151 = vector.broadcast %149 : vector<1x16xf32> to vector<16x16xf32>
    %152 = arith.addf %150, %151 : vector<16x16xf32>
    %c0_55 = arith.constant 0 : index
    %153 = memref.load %arg11[%c0_55] : memref<4xf32, #tpu.memory_space<smem>>
    %154 = vector.broadcast %153 : f32 to vector<16x16xf32>
    %155 = arith.mulf %1, %154 : vector<16x16xf32>
    %156 = arith.addf %152, %155 : vector<16x16xf32>
    %cst_56 = arith.constant 0.000000e+00 : f32
    %157 = vector.broadcast %cst_56 : f32 to vector<16x16xf32>
    %158 = arith.cmpf ogt, %156, %157 : vector<16x16xf32>
    %cst_57 = arith.constant 2.000000e-01 : f32
    %159 = vector.broadcast %cst_57 : f32 to vector<16x16xf32>
    %160 = arith.mulf %159, %156 : vector<16x16xf32>
    %161 = arith.select %158, %156, %160 : vector<16x16xi1>, vector<16x16xf32>
    %162 = arith.addf %161, %6 : vector<16x16xf32>
    %cst_58 = arith.constant dense<0xFF800000> : vector<16xf32>
    %163 = vector.multi_reduction <maximumf>, %162, %cst_58 [1] : vector<16x16xf32> to vector<16xf32>
    %164 = vector.shape_cast %163 : vector<16xf32> to vector<16x1xf32>
    %165 = vector.broadcast %164 : vector<16x1xf32> to vector<16x16xf32>
    %166 = arith.subf %162, %165 : vector<16x16xf32>
    %167 = math.exp %166 : vector<16x16xf32>
    %cst_59 = arith.constant dense<0.000000e+00> : vector<16xf32>
    %168 = vector.multi_reduction <add>, %167, %cst_59 [1] : vector<16x16xf32> to vector<16xf32>
    %169 = vector.shape_cast %168 : vector<16xf32> to vector<16x1xf32>
    %cst_60 = arith.constant dense<0.000000e+00> : vector<16x32xf32>
    %170 = tpu.matmul %167, %147, %cst_60 {dimension_numbers = #tpu.dot_dimension_numbers<[1], [0], [0], [1], [0, 0, 1, 1], [], []>} : vector<16x16xf32>, vector<16x32xf32>, vector<16x32xf32> -> vector<16x32xf32>
    %cst_61 = arith.constant 4.000000e+00 : f32
    %171 = vector.broadcast %cst_61 : f32 to vector<16x1xf32>
    %172 = arith.mulf %169, %171 : vector<16x1xf32>
    %173 = tpu.reciprocal %172 {approx = true} : vector<16x1xf32> -> vector<16x1xf32>
    %174 = vector.broadcast %173 : vector<16x1xf32> to vector<16x32xf32>
    %175 = arith.mulf %170, %174 : vector<16x32xf32>
    %176 = arith.addf %146, %175 : vector<16x32xf32>
    %177 = vector.extract_strided_slice %141 {offsets = [0, 32], sizes = [16, 32], strides = [1, 1]} : vector<16x128xf32> to vector<16x32xf32>
    %178 = vector.extract_strided_slice %143 {offsets = [0, 1], sizes = [16, 1], strides = [1, 1]} : vector<16x4xf32> to vector<16x1xf32>
    %179 = vector.extract_strided_slice %145 {offsets = [1, 0], sizes = [1, 16], strides = [1, 1]} : vector<4x16xf32> to vector<1x16xf32>
    %180 = vector.broadcast %178 : vector<16x1xf32> to vector<16x16xf32>
    %181 = vector.broadcast %179 : vector<1x16xf32> to vector<16x16xf32>
    %182 = arith.addf %180, %181 : vector<16x16xf32>
    %c1_62 = arith.constant 1 : index
    %183 = memref.load %arg11[%c1_62] : memref<4xf32, #tpu.memory_space<smem>>
    %184 = vector.broadcast %183 : f32 to vector<16x16xf32>
    %185 = arith.mulf %1, %184 : vector<16x16xf32>
    %186 = arith.addf %182, %185 : vector<16x16xf32>
    %cst_63 = arith.constant 0.000000e+00 : f32
    %187 = vector.broadcast %cst_63 : f32 to vector<16x16xf32>
    %188 = arith.cmpf ogt, %186, %187 : vector<16x16xf32>
    %cst_64 = arith.constant 2.000000e-01 : f32
    %189 = vector.broadcast %cst_64 : f32 to vector<16x16xf32>
    %190 = arith.mulf %189, %186 : vector<16x16xf32>
    %191 = arith.select %188, %186, %190 : vector<16x16xi1>, vector<16x16xf32>
    %192 = arith.addf %191, %6 : vector<16x16xf32>
    %cst_65 = arith.constant dense<0xFF800000> : vector<16xf32>
    %193 = vector.multi_reduction <maximumf>, %192, %cst_65 [1] : vector<16x16xf32> to vector<16xf32>
    %194 = vector.shape_cast %193 : vector<16xf32> to vector<16x1xf32>
    %195 = vector.broadcast %194 : vector<16x1xf32> to vector<16x16xf32>
    %196 = arith.subf %192, %195 : vector<16x16xf32>
    %197 = math.exp %196 : vector<16x16xf32>
    %cst_66 = arith.constant dense<0.000000e+00> : vector<16xf32>
    %198 = vector.multi_reduction <add>, %197, %cst_66 [1] : vector<16x16xf32> to vector<16xf32>
    %199 = vector.shape_cast %198 : vector<16xf32> to vector<16x1xf32>
    %cst_67 = arith.constant dense<0.000000e+00> : vector<16x32xf32>
    %200 = tpu.matmul %197, %177, %cst_67 {dimension_numbers = #tpu.dot_dimension_numbers<[1], [0], [0], [1], [0, 0, 1, 1], [], []>} : vector<16x16xf32>, vector<16x32xf32>, vector<16x32xf32> -> vector<16x32xf32>
    %cst_68 = arith.constant 4.000000e+00 : f32
    %201 = vector.broadcast %cst_68 : f32 to vector<16x1xf32>
    %202 = arith.mulf %199, %201 : vector<16x1xf32>
    %203 = tpu.reciprocal %202 {approx = true} : vector<16x1xf32> -> vector<16x1xf32>
    %204 = vector.broadcast %203 : vector<16x1xf32> to vector<16x32xf32>
    %205 = arith.mulf %200, %204 : vector<16x32xf32>
    %206 = arith.addf %176, %205 : vector<16x32xf32>
    %207 = vector.extract_strided_slice %141 {offsets = [0, 64], sizes = [16, 32], strides = [1, 1]} : vector<16x128xf32> to vector<16x32xf32>
    %208 = vector.extract_strided_slice %143 {offsets = [0, 2], sizes = [16, 1], strides = [1, 1]} : vector<16x4xf32> to vector<16x1xf32>
    %209 = vector.extract_strided_slice %145 {offsets = [2, 0], sizes = [1, 16], strides = [1, 1]} : vector<4x16xf32> to vector<1x16xf32>
    %210 = vector.broadcast %208 : vector<16x1xf32> to vector<16x16xf32>
    %211 = vector.broadcast %209 : vector<1x16xf32> to vector<16x16xf32>
    %212 = arith.addf %210, %211 : vector<16x16xf32>
    %c2_69 = arith.constant 2 : index
    %213 = memref.load %arg11[%c2_69] : memref<4xf32, #tpu.memory_space<smem>>
    %214 = vector.broadcast %213 : f32 to vector<16x16xf32>
    %215 = arith.mulf %1, %214 : vector<16x16xf32>
    %216 = arith.addf %212, %215 : vector<16x16xf32>
    %cst_70 = arith.constant 0.000000e+00 : f32
    %217 = vector.broadcast %cst_70 : f32 to vector<16x16xf32>
    %218 = arith.cmpf ogt, %216, %217 : vector<16x16xf32>
    %cst_71 = arith.constant 2.000000e-01 : f32
    %219 = vector.broadcast %cst_71 : f32 to vector<16x16xf32>
    %220 = arith.mulf %219, %216 : vector<16x16xf32>
    %221 = arith.select %218, %216, %220 : vector<16x16xi1>, vector<16x16xf32>
    %222 = arith.addf %221, %6 : vector<16x16xf32>
    %cst_72 = arith.constant dense<0xFF800000> : vector<16xf32>
    %223 = vector.multi_reduction <maximumf>, %222, %cst_72 [1] : vector<16x16xf32> to vector<16xf32>
    %224 = vector.shape_cast %223 : vector<16xf32> to vector<16x1xf32>
    %225 = vector.broadcast %224 : vector<16x1xf32> to vector<16x16xf32>
    %226 = arith.subf %222, %225 : vector<16x16xf32>
    %227 = math.exp %226 : vector<16x16xf32>
    %cst_73 = arith.constant dense<0.000000e+00> : vector<16xf32>
    %228 = vector.multi_reduction <add>, %227, %cst_73 [1] : vector<16x16xf32> to vector<16xf32>
    %229 = vector.shape_cast %228 : vector<16xf32> to vector<16x1xf32>
    %cst_74 = arith.constant dense<0.000000e+00> : vector<16x32xf32>
    %230 = tpu.matmul %227, %207, %cst_74 {dimension_numbers = #tpu.dot_dimension_numbers<[1], [0], [0], [1], [0, 0, 1, 1], [], []>} : vector<16x16xf32>, vector<16x32xf32>, vector<16x32xf32> -> vector<16x32xf32>
    %cst_75 = arith.constant 4.000000e+00 : f32
    %231 = vector.broadcast %cst_75 : f32 to vector<16x1xf32>
    %232 = arith.mulf %229, %231 : vector<16x1xf32>
    %233 = tpu.reciprocal %232 {approx = true} : vector<16x1xf32> -> vector<16x1xf32>
    %234 = vector.broadcast %233 : vector<16x1xf32> to vector<16x32xf32>
    %235 = arith.mulf %230, %234 : vector<16x32xf32>
    %236 = arith.addf %206, %235 : vector<16x32xf32>
    %237 = vector.extract_strided_slice %141 {offsets = [0, 96], sizes = [16, 32], strides = [1, 1]} : vector<16x128xf32> to vector<16x32xf32>
    %238 = vector.extract_strided_slice %143 {offsets = [0, 3], sizes = [16, 1], strides = [1, 1]} : vector<16x4xf32> to vector<16x1xf32>
    %239 = vector.extract_strided_slice %145 {offsets = [3, 0], sizes = [1, 16], strides = [1, 1]} : vector<4x16xf32> to vector<1x16xf32>
    %240 = vector.broadcast %238 : vector<16x1xf32> to vector<16x16xf32>
    %241 = vector.broadcast %239 : vector<1x16xf32> to vector<16x16xf32>
    %242 = arith.addf %240, %241 : vector<16x16xf32>
    %c3_76 = arith.constant 3 : index
    %243 = memref.load %arg11[%c3_76] : memref<4xf32, #tpu.memory_space<smem>>
    %244 = vector.broadcast %243 : f32 to vector<16x16xf32>
    %245 = arith.mulf %1, %244 : vector<16x16xf32>
    %246 = arith.addf %242, %245 : vector<16x16xf32>
    %cst_77 = arith.constant 0.000000e+00 : f32
    %247 = vector.broadcast %cst_77 : f32 to vector<16x16xf32>
    %248 = arith.cmpf ogt, %246, %247 : vector<16x16xf32>
    %cst_78 = arith.constant 2.000000e-01 : f32
    %249 = vector.broadcast %cst_78 : f32 to vector<16x16xf32>
    %250 = arith.mulf %249, %246 : vector<16x16xf32>
    %251 = arith.select %248, %246, %250 : vector<16x16xi1>, vector<16x16xf32>
    %252 = arith.addf %251, %6 : vector<16x16xf32>
    %cst_79 = arith.constant dense<0xFF800000> : vector<16xf32>
    %253 = vector.multi_reduction <maximumf>, %252, %cst_79 [1] : vector<16x16xf32> to vector<16xf32>
    %254 = vector.shape_cast %253 : vector<16xf32> to vector<16x1xf32>
    %255 = vector.broadcast %254 : vector<16x1xf32> to vector<16x16xf32>
    %256 = arith.subf %252, %255 : vector<16x16xf32>
    %257 = math.exp %256 : vector<16x16xf32>
    %cst_80 = arith.constant dense<0.000000e+00> : vector<16xf32>
    %258 = vector.multi_reduction <add>, %257, %cst_80 [1] : vector<16x16xf32> to vector<16xf32>
    %259 = vector.shape_cast %258 : vector<16xf32> to vector<16x1xf32>
    %cst_81 = arith.constant dense<0.000000e+00> : vector<16x32xf32>
    %260 = tpu.matmul %257, %237, %cst_81 {dimension_numbers = #tpu.dot_dimension_numbers<[1], [0], [0], [1], [0, 0, 1, 1], [], []>} : vector<16x16xf32>, vector<16x32xf32>, vector<16x32xf32> -> vector<16x32xf32>
    %cst_82 = arith.constant 4.000000e+00 : f32
    %261 = vector.broadcast %cst_82 : f32 to vector<16x1xf32>
    %262 = arith.mulf %259, %261 : vector<16x1xf32>
    %263 = tpu.reciprocal %262 {approx = true} : vector<16x1xf32> -> vector<16x1xf32>
    %264 = vector.broadcast %263 : vector<16x1xf32> to vector<16x32xf32>
    %265 = arith.mulf %260, %264 : vector<16x32xf32>
    %266 = arith.addf %236, %265 : vector<16x32xf32>
    %c0_83 = arith.constant 0 : index
    %c0_84 = arith.constant 0 : index
    %267 = vector.load %arg12[%c0_83, %c0_84] : memref<1x32xf32, #tpu.memory_space<vmem>>, vector<1x32xf32>
    %268 = vector.broadcast %267 : vector<1x32xf32> to vector<16x32xf32>
    %269 = arith.addf %266, %268 : vector<16x32xf32>
    %cst_85 = arith.constant 0.000000e+00 : f32
    %270 = vector.broadcast %cst_85 : f32 to vector<16x32xf32>
    %271 = arith.maximumf %269, %270 : vector<16x32xf32>
    %c0_86 = arith.constant 0 : index
    %c0_87 = arith.constant 0 : index
    %272 = vector.load %arg13[%c0_86, %c0_87] : memref<16x32xf32, #tpu.memory_space<vmem>>, vector<16x32xf32>
    tpu.vector_store %arg13[%c0_86, %c0_87], %271 {strides = array<i32>} : memref<16x32xf32, #tpu.memory_space<vmem>>, vector<16x32xf32>,
    return
  }
}

</mosaic_0001>

<bundles_post_ra>
// kernel: tpu_custom_call.1
= control target key start
LH: loop header
LB: loop body
LE: loop exit
PB: predicated region body
PF: predicated region fallthrough
CT: control target
= control target key end

     0   :  { %18 = vsyncpa [#allocation4], 0  ;;  %s2749_s0 = inlined_call_operand.vmem [shape: f32[16,4], index: 0, kind: input, shape index: {}]   ;;  %s2750_s1 = inlined_call_operand.vmem [shape: f32[16,16], index: 1, kind: input, shape index: {}]   ;;  %s2751_s2 = inlined_call_operand.vmem [shape: f32[16,16], index: 2, kind: input, shape index: {}]   ;;  %s2752_s3 = inlined_call_operand.vmem [shape: f32[4,128], index: 3, kind: input, shape index: {}]   ;;  %s2753_s4 = inlined_call_operand.vmem [shape: f32[128,4], index: 4, kind: input, shape index: {}]   ;;  %s2754_s5 = inlined_call_operand.vmem [shape: f32[4,128], index: 5, kind: input, shape index: {}]   ;;  %s2755_s6 = inlined_call_operand.vmem [shape: f32[4], index: 6, kind: input, shape index: {}]   ;;  %s2756_s7 = inlined_call_operand.vmem [shape: f32[1,32], index: 7, kind: input, shape index: {}]   ;;  %s2757_s8 = inlined_call_operand.vmem [shape: f32[32,128], index: 8, kind: input, shape index: {}]   ;;  %s2758_s9 = inlined_call_operand.vmem [shape: f32[128,4], index: 9, kind: input, shape index: {}]   ;;  %s2759_s10 = inlined_call_operand.vmem [shape: f32[4,128], index: 10, kind: input, shape index: {}]   ;;  %s2760_s11 = inlined_call_operand.vmem [shape: f32[4], index: 11, kind: input, shape index: {}]   ;;  %s2761_s12 = inlined_call_operand.vmem [shape: f32[1,32], index: 12, kind: input, shape index: {}]   ;;  %s2762_s13 = inlined_call_operand.hbm [shape: f32[16,32], index: 13, kind: output, shape index: {}]  }
   0x1   :  { %19 = vsyncpa [#allocation6], 0 }
   0x2   :  { %20 = vsyncpa [#allocation3], 0  ;;  %s39_s27 = sshll.u32 %s2755_s6, 4  ;;  %s57_s30 = sshll.u32 %s2760_s11, 4  ;;  %s40_s27 = int_to_ptr.vmem [resolvable:$true] %s39_s27  ;;  %s58_s30 = int_to_ptr.vmem [resolvable:$true] %s57_s30 }
   0x3   :  { %s2246_s14 = scalar_lea.vmem %s40_s27, 16  ;;  %p2251_p1 = scmp.lt.s32.totalorder %s40_s27, %s40_s27 }
   0x4   :  { %p2247_p0 = scmp.ne.s32.totalorder %s40_s27, %s2246_s14  ;;  %p2252_p2 = scmp.lt.s32.totalorder %s2246_s14, %s2246_s14 }
   0x6   :  { %p2253_p3 = por %p2252_p2, %p2251_p1 }
   0x8   :  { %p2254_p4 = pnand %p2253_p3, %p2247_p0 }
   0xa   :  { %2257 = shalt.err (!%p2254_p4)
}
   0xb   :  { %s2298_s15 = smov [#allocation2]   ;;  %s2258_s16 = scalar_lea.vmem %s58_s30, 16 }
   0xc   :  { %42 = dma.vmem_to_smem %s40_s27, 16, %s2298_s15, [#allocation4]  }
   0xd   :  { %p2259_p5 = scmp.ne.s32.totalorder %s58_s30, %s2258_s16  ;;  %p2263_p6 = scmp.lt.s32.totalorder %s58_s30, %s58_s30 }
   0xe   :  { %p2264_p7 = scmp.lt.s32.totalorder %s2258_s16, %s2258_s16 }
  0x10   :  { %p2265_p8 = por %p2264_p7, %p2263_p6 }
  0x12   :  { %p2266_p9 = pnand %p2265_p8, %p2259_p5 }
  0x14   :  { %2269 = shalt.err (!%p2266_p9)
}
  0x15   :  { %s2299_s6 = smov [#allocation5]  }
  0x16   :  { %60 = dma.vmem_to_smem %s58_s30, 16, %s2299_s6, [#allocation6]  }
  0x17   :  { %2292 = dma.done.wait [#allocation4], 16  }
  0x18   :  { %2293 = vsyncadd [#allocation4], 4294967280 }
  0x19   :  { %2294 = dma.done.wait [#allocation6], 16  }
  0x1a   :  { %2295 = vsyncadd [#allocation6], 4294967280 }
  0x1b   :  { %69 = sfence }
  0x1c   :  { %v80_v0 = vld [vmem:[%s2752_s3] sm:$0xf]  ;;  %vm88_vm0 = vcmask 1043456   ;;  %vm81_vm1 = vcmask 31744   ;;  %v79_v2 = vld [vmem:[%s2749_s0 + $0x8] sm:$0xff]  ;;  %v169_v5 = vld [vmem:[%s2753_s4 + $0x10] sm:$0xff]  ;;  %v339_v42 = vlaneseq }
  0x1d   :  { %v78_v1 = vld [vmem:[%s2749_s0] sm:$0xff]  ;;  %1856 = vmatprep.subr.msk.mxu0 %vm88_vm0, %v80_v0  ;;  %v168_v4 = vld [vmem:[%s2753_s4 + $0x8] sm:$0xff]  ;;  %v170_v7 = vld [vmem:[%s2753_s4 + $0x18] sm:$0xff]  ;;  %v2300_v27 = vmov 0.0|0.0   ;;  %vm2301_vm2 = vmmov 0   ;;  %v2302_v28 = vmov 0.0  }
  0x1e   :  { %1858 = vmatprep.mubr.msk.f32.mxu0 %vm81_vm1, %v78_v1  ;;  %v167_v3 = vld [vmem:[%s2753_s4] sm:$0xff]  ;;  %1857 = vmatpush3.msk.msra.mxu0 %vm88_vm0, %v80_v0  ;;  %v2016_v8 = vpack.c.bf16 %v170_v7, %v169_v5  ;;  %v172_v10 = vld [vmem:[%s2753_s4 + $0x28] sm:$0xff]  ;;  %v173_v12 = vld [vmem:[%s2753_s4 + $0x30] sm:$0xff]  ;;  %v2303_v29 = vmov 1   ;;  %v2304_v30 = vmov 0   ;;  %v2305_v39 = vmov 2  }
  0x1f   :  { %v2012_v6 = vpack.c.bf16 %v168_v4, %v167_v3  ;;  %1859 = vmatmul.mubr.msk.f32.vlgmr.msra.gmra.mrb[0].mxu0 %vm81_vm1, %v79_v2  ;;  %v171_v9 = vld [vmem:[%s2753_s4 + $0x20] sm:$0xff]  ;;  %v174_v13 = vld [vmem:[%s2753_s4 + $0x38] sm:$0xff]  ;;  %v176_v16 = vld [vmem:[%s2753_s4 + $0x48] sm:$0xff]  ;;  %2044 = vmatprep.subr.bf16.mxu0 %v2300_v27  ;;  %v2306_v41 = vmov 3   ;;  %s1749_s15 = sld [smem:[#allocation2 + $0x1]]  ;;  %s345_s16 = sld [smem:[#allocation2]] }
  0x20   :  { %v2020_v11 = vpack.c.bf16 %v172_v10, %v171_v9  ;;  %v2024_v14 = vpack.c.bf16 %v174_v13, %v173_v12  ;;  %v175_v15 = vld [vmem:[%s2753_s4 + $0x40] sm:$0xff]  ;;  %v177_v18 = vld [vmem:[%s2753_s4 + $0x50] sm:$0xff]  ;;  %v178_v19 = vld [vmem:[%s2753_s4 + $0x58] sm:$0xff]  ;;  %1900 = vmatprep.mubr.msk.f32.mxu0 %vm2301_vm2, %v2302_v28  ;;  %2139 = vset.pattern.permute.xlu1 %v2303_v29  ;;  %v2464_v43 = vshrl.u32 %v339_v42, 7  ;;  %s2468_s6 = sld [smem:[#allocation2 + $0x2]]  ;;  %s2496_s24 = sld [smem:[#allocation2 + $0x3]] }
  0x21   :  { %2013 = vmatprep.subr.bf16.mxu1 %v2012_v6  ;;  %v2028_v17 = vpack.c.bf16 %v176_v16, %v175_v15  ;;  %v2032_v20 = vpack.c.bf16 %v178_v19, %v177_v18  ;;  %v179_v21 = vld [vmem:[%s2753_s4 + $0x60] sm:$0xff]  ;;  %v180_v22 = vld [vmem:[%s2753_s4 + $0x68] sm:$0xff]  ;;  %v181_v24 = vld [vmem:[%s2753_s4 + $0x70] sm:$0xff]  ;;  %2138 = vset.pattern.permute.xlu0 %v2304_v30  ;;  %v2308_v5 = vmov -1e+30   ;;  %vm359_vm6 = vcmask 130048  }
  0x22   :  { %2015 = vmatpush3.bf16.msra.mxu1 %v2012_v6  ;;  %v2036_v23 = vpack.c.bf16 %v180_v22, %v179_v21  ;;  %v182_v25 = vld [vmem:[%s2753_s4 + $0x78] sm:$0xff]  ;;  %v258_v35 = vld [vmem:[%s2754_s5] sm:$0xf]  ;;  %s2307_s5 = smov 96   ;;  %v477_v44 = vsub.s32 1, %v2464_v43  ;;  %v341_v45 = vsub.s32 0, %v2464_v43 }
  0x23   :  { %2017 = vmatprep.subr.bf16.mxu1 %v2016_v8  ;;  %v2040_v26 = vpack.c.bf16 %v182_v25, %v181_v24  ;;  %v2473_v47 = vld [vmem:[%s2751_s2 + $0x8] sm:$0xff]  ;;  %v2489_v54 = vld [vmem:[%s2751_s2] sm:$0xff]  ;;  %v620_v57 = vsub.s32 2, %v2464_v43  ;;  %v761_v7 = vsub.s32 3, %v2464_v43  ;;  %s2310_s2 = smov 64   ;;  %vm907_vm14 = vcmask 261120  }
  0x24   :  { %v71_v51 = vld [vmem:[%s2750_s1 + $0x8] sm:$0xff]  ;;  %v70_v60 = vld [vmem:[%s2750_s1] sm:$0xff]  ;;  %s2309_s1 = smov 32   ;;  %s2648_s21 = sld [smem:[#allocation5 + $0x1]] }
  0x25   :  { %v482_v46 = vstv %s1749_s15  ;;  %v346_v48 = vstv %s345_s16  ;;  %vm75_vm3 = vcmp.gt.f32.partialorder %v71_v51, 0.0  ;;  %vm74_vm4 = vcmp.gt.f32.partialorder %v70_v60, 0.0  ;;  %s2654_s22 = sld [smem:[#allocation5 + $0x2]]  ;;  %s2675_s23 = sld [smem:[#allocation5 + $0x3]] }
  0x26   :  { %2019 = vmatpush3.bf16.msra.mxu1 %v2016_v8  ;;  %v484_v52 = vmul.f32 %v482_v46, %v2473_v47  ;;  %v348_v53 = vmul.f32 %v346_v48, %v2473_v47  ;;  %v483_v61 = vmul.f32 %v482_v46, %v2489_v54  ;;  %v347_v0 = vmul.f32 %v346_v48, %v2489_v54 }
  0x27   :  { %2021 = vmatprep.subr.bf16.mxu1 %v2020_v11  ;;  %v625_v1 = vstv %s2468_s6  ;;  %v2503_v6 = vsel %vm75_vm3, 0.0, %v2308_v5 }
  0x28   :  { %v627_v12 = vmul.f32 %v625_v1, %v2473_v47 }
  0x2a   :  { %2023 = vmatpush3.bf16.msra.mxu1 %v2020_v11 }
  0x2b   :  { %2025 = vmatprep.subr.bf16.mxu1 %v2024_v14 }
  0x2e   :  { %2027 = vmatpush3.bf16.msra.mxu1 %v2024_v14 }
  0x2f   :  { %2029 = vmatprep.subr.bf16.mxu1 %v2028_v17 }
  0x32   :  { %2031 = vmatpush3.bf16.msra.mxu1 %v2028_v17  ;;  %v626_v17 = vmul.f32 %v625_v1, %v2489_v54 }
  0x33   :  { %2033 = vmatprep.subr.bf16.mxu1 %v2032_v20 }
  0x36   :  { %2035 = vmatpush3.bf16.msra.mxu1 %v2032_v20  ;;  %v2515_v20 = vsel %vm74_vm4, 0.0, %v2308_v5 }
  0x37   :  { %2037 = vmatprep.subr.bf16.mxu1 %v2036_v23 }
  0x3a   :  { %2039 = vmatpush3.bf16.msra.mxu1 %v2036_v23 }
  0x3b   :  { %2041 = vmatprep.subr.bf16.mxu1 %v2040_v26 }
  0x3e   :  { %2043 = vmatpush3.bf16.msra.mxu1 %v2040_v26 }
  0xf2   :  { %v1860_v31 = vpop.f32.mrb[0].mxu0 }
  0xf3   :  { %v158_v32 = vpop.f32.mrb[1].mxu0 }
  0xf4   :  { %1893 = vmatprep.mubr.f32.mxu1 %v158_v32  ;;  %v2045_v33 = vpack.c.bf16 %v1860_v31, %v158_v32  ;;  %v2451_v34 = vpack.i.bf16 %v1860_v31, %v158_v32 }
  0xf5   :  { %1894 = vmatmul.mubr.f32.vlgmr.msra.gmra.mrb[0].mxu1 %v1860_v31  ;;  %v766_v31 = vstv %s2496_s24 }
  0xf6   :  { %2046 = vmatpush3.bf16.xpose.msra.mxu0 %v2045_v33  ;;  %v767_v42 = vmul.f32 %v766_v31, %v2489_v54  ;;  %v768_v46 = vmul.f32 %v766_v31, %v2473_v47 }
  0xf7   :  { %2048 = vmatprep.subr.bf16.mxu0 %v2045_v33 }
  0xfd   :  { %1901 = vmatmul.mubr.f32.vlgmr.msra.gmra.mrb[2].mxu0 %v258_v35 }
  0xfe   :  { %2050 = vmatpush3.bf16.msra.mxu0 %v2045_v33 }
 0x1c8   :  { %v1895_v36 = vpop.f32.mrb[0].mxu1 }
 0x1c9   :  { %472 = vperm.xlu1 %2139, %v1895_v36   ;;  %336 = vperm.xlu0 %2138, %v1895_v36   ;;  %v249_v37 = vpop.f32.mrb[1].mxu1 }
 0x1cd   :  { %468 = vperm.xlu1 %2139, %v249_v37   ;;  %331 = vperm.xlu0 %2138, %v249_v37  }
 0x1d0   :  { %v2456_v38 = vpop.f32.mrb[2].mxu0 }
 0x1d1   :  { %2140 = vset.pattern.permute.xlu1 %v2305_v39  ;;  %2141 = vset.pattern.permute.xlu0 %v2305_v39  ;;  %v1902_v40 = vpop.f32.mrb[3].mxu0  ;;  %v478_v49 = vrot.slane %v2456_v38, %v477_v44  ;;  %v342_v50 = vrot.slane %v2456_v38, %v341_v45  ;;  %v621_v4 = vrot.slane %v2456_v38, %v620_v57 }
 0x1d2   :  { %615 = vperm.xlu1 %2140, %v1895_v36   ;;  %611 = vperm.xlu0 %2141, %v249_v37   ;;  %v762_v40 = vrot.slane %v2456_v38, %v761_v7 }
 0x1d6   :  { %2142 = vset.pattern.permute.xlu1 %v2306_v41  ;;  %2143 = vset.pattern.permute.xlu0 %v2306_v41 }
 0x1d7   :  { %752 = vperm.xlu1 %2142, %v249_v37   ;;  %756 = vperm.xlu0 %2143, %v1895_v36  }
 0x1db   :  { %2145 = vrot.lane.b32.xlu1 %v2451_v34, %s2307_s5  ;;  %2159 = vset.pattern.permute.xlu0 %v2304_v30 }
 0x1dc   :  { %2160 = vset.pattern.permute.xlu1 %v2304_v30 }
 0x248   :  { %v473_v55 = vpop.permute.xlu1 %472  ;;  %v337_v56 = vpop.permute.xlu0 %336 }
 0x249   :  { %v480_v58 = vadd.f32 %v478_v49, %v473_v55  ;;  %v344_v59 = vadd.f32 %v342_v50, %v337_v56 }
 0x24b   :  { %v486_v62 = vadd.f32 %v484_v52, %v480_v58  ;;  %v350_v63 = vadd.f32 %v348_v53, %v344_v59 }
 0x24c   :  { %v469_v2 = vpop.permute.xlu1 %468  ;;  %v332_v3 = vpop.permute.xlu0 %331 }
 0x24d   :  { %v490_v8 = vmul.f32 0.2, %v486_v62  ;;  %v354_v9 = vmul.f32 0.2, %v350_v63  ;;  %v479_v10 = vadd.f32 %v478_v49, %v469_v2  ;;  %v343_v11 = vadd.f32 %v342_v50, %v332_v3 }
 0x24e   :  { %vm352_vm5 = vcmp.gt.f32.partialorder %v350_v63, 0.0  ;;  %vm488_vm7 = vcmp.gt.f32.partialorder %v486_v62, 0.0 }
 0x24f   :  { %v485_v13 = vadd.f32 %v483_v61, %v479_v10  ;;  %v349_v14 = vadd.f32 %v347_v0, %v343_v11  ;;  %v356_v15 = vsel %vm352_vm5, %v350_v63, %v354_v9  ;;  %v492_v16 = vsel %vm488_vm7, %v486_v62, %v490_v8 }
 0x250   :  { %v2509_v18 = vadd.f32 %v356_v15, %v2503_v6  ;;  %v2512_v19 = vadd.f32 %v492_v16, %v2503_v6 }
 0x251   :  { %v489_v21 = vmul.f32 0.2, %v485_v13  ;;  %v353_v22 = vmul.f32 0.2, %v349_v14  ;;  %v616_v23 = vpop.permute.xlu1 %615  ;;  %v612_v24 = vpop.permute.xlu0 %611  ;;  %vm351_vm8 = vcmp.gt.f32.partialorder %v349_v14, 0.0  ;;  %vm487_vm9 = vcmp.gt.f32.partialorder %v485_v13, 0.0 }
 0x252   :  { %v623_v25 = vadd.f32 %v621_v4, %v616_v23  ;;  %v622_v26 = vadd.f32 %v621_v4, %v612_v24  ;;  %v363_v30 = vsel %vm359_vm6, %v2509_v18, -inf  ;;  %v498_v48 = vsel %vm359_vm6, %v2512_v19, -inf }
 0x253   :  { %364 = vmax.xlane.f32.xlu0 %v363_v30  ;;  %v355_v32 = vsel %vm351_vm8, %v349_v14, %v353_v22  ;;  %v491_v33 = vsel %vm487_vm9, %v485_v13, %v489_v21 }
 0x254   :  { %v629_v35 = vadd.f32 %v627_v12, %v623_v25  ;;  %v628_v36 = vadd.f32 %v626_v17, %v622_v26  ;;  %v357_v37 = vadd.f32 %v355_v32, %v2515_v20  ;;  %v493_v55 = vadd.f32 %v491_v33, %v2515_v20 }
 0x256   :  { %v633_v49 = vmul.f32 0.2, %v629_v35  ;;  %v632_v50 = vmul.f32 0.2, %v628_v36  ;;  %v753_v51 = vpop.permute.xlu1 %752  ;;  %v757_v52 = vpop.permute.xlu0 %756  ;;  %v360_v53 = vsel %vm359_vm6, %v357_v37, -inf  ;;  %vm631_vm10 = vcmp.gt.f32.partialorder %v629_v35, 0.0 }
 0x257   :  { %v763_v56 = vadd.f32 %v762_v40, %v753_v51  ;;  %v764_v58 = vadd.f32 %v762_v40, %v757_v52  ;;  %499 = vmax.xlane.f32.xlu0 %v498_v48  ;;  %361 = vmax.xlane.f32.xlu1 %v360_v53  ;;  %vm630_vm11 = vcmp.gt.f32.partialorder %v628_v36, 0.0  ;;  %v495_v0 = vsel %vm359_vm6, %v493_v55, -inf }
 0x258   :  { %v635_v38 = vsel %vm631_vm10, %v629_v35, %v633_v49  ;;  %v634_v59 = vsel %vm630_vm11, %v628_v36, %v632_v50 }
 0x259   :  { %v769_v60 = vadd.f32 %v767_v42, %v763_v56  ;;  %v770_v61 = vadd.f32 %v768_v46, %v764_v58  ;;  %v637_v62 = vadd.f32 %v635_v38, %v2503_v6  ;;  %v636_v1 = vadd.f32 %v634_v59, %v2515_v20 }
 0x25a   :  { %v2146_v63 = vpop.permute.xlu1 %2145 }
 0x25b   :  { %v773_v2 = vmul.f32 0.2, %v769_v60  ;;  %v774_v3 = vmul.f32 0.2, %v770_v61  ;;  %v2148_v4 = vunpack.i.h.bf16 %v2146_v63  ;;  %v2147_v5 = vunpack.i.l.bf16 %v2146_v63  ;;  %496 = vmax.xlane.f32.xlu1 %v495_v0 }
 0x25c   :  { %v641_v8 = vsel %vm359_vm6, %v637_v62, -inf  ;;  %vm772_vm12 = vcmp.gt.f32.partialorder %v770_v61, 0.0  ;;  %vm771_vm13 = vcmp.gt.f32.partialorder %v769_v60, 0.0  ;;  %v638_v12 = vsel %vm359_vm6, %v636_v1, -inf }
 0x25d   :  { %v2534_v9 = vpack.c.bf16 %v2148_v4, %v2147_v5  ;;  %642 = vmax.xlane.f32.xlu0 %v641_v8  ;;  %v776_v10 = vsel %vm772_vm12, %v770_v61, %v774_v3  ;;  %v775_v11 = vsel %vm771_vm13, %v769_v60, %v773_v2 }
 0x25e   :  { %v778_v13 = vadd.f32 %v776_v10, %v2503_v6  ;;  %v777_v14 = vadd.f32 %v775_v11, %v2515_v20 }
 0x25f   :  { %2052 = vmatprep.subr.bf16.mxu0 %v2534_v9  ;;  %639 = vmax.xlane.f32.xlu1 %v638_v12 }
 0x260   :  { %v782_v15 = vsel %vm359_vm6, %v778_v13, -inf  ;;  %v779_v16 = vsel %vm359_vm6, %v777_v14, -inf }
 0x261   :  { %783 = vmax.xlane.f32.xlu0 %v782_v15  ;;  %v903_v15 = vld [vmem:[%s2757_s8] sm:$0xff] }
 0x263   :  { %780 = vmax.xlane.f32.xlu1 %v779_v16  ;;  %v904_v16 = vld [vmem:[%s2757_s8 + $0x8] sm:$0xff] }
 0x274   :  { %2155 = vrot.lane.b32.xlu1 %v2451_v34, %s2309_s1 }
 0x277   :  { %2150 = vrot.lane.b32.xlu0 %v2451_v34, %s2310_s2 }
 0x2e0   :  { %v365_v17 = vpop.xlane.xlu0 %364 }
 0x2e1   :  { %v367_v21 = vsub.f32 %v2509_v18, %v365_v17  ;;  %v2063_v17 = vpack.c.bf16 %v904_v16, %v903_v15 }
 0x2e3   :  { %v370_v22 = vmul.f32 1.442695, %v367_v21  ;;  %v905_v21 = vld [vmem:[%s2757_s8 + $0x10] sm:$0xff] }
 0x2e4   :  { %v500_v23 = vpop.xlane.xlu0 %499  ;;  %v362_v24 = vpop.xlane.xlu1 %361 }
 0x2e5   :  { %2182 = vpow2.f32 %v370_v22  ;;  %v502_v25 = vsub.f32 %v2512_v19, %v500_v23  ;;  %v366_v26 = vsub.f32 %v357_v37, %v362_v24  ;;  %v906_v22 = vld [vmem:[%s2757_s8 + $0x18] sm:$0xff]  ;;  %v989_v24 = vld [vmem:[%s2758_s9] sm:$0xff] }
 0x2e6   :  { %v2067_v23 = vpack.c.bf16 %v906_v22, %v905_v21 }
 0x2e7   :  { %v505_v30 = vmul.f32 1.442695, %v502_v25  ;;  %v368_v31 = vmul.f32 1.442695, %v366_v26  ;;  %v990_v25 = vld [vmem:[%s2758_s9 + $0x8] sm:$0xff]  ;;  %v991_v26 = vld [vmem:[%s2758_s9 + $0x10] sm:$0xff] }
 0x2e8   :  { %v497_v32 = vpop.xlane.xlu1 %496 }
 0x2e9   :  { %2184 = vpow2.f32 %v505_v30  ;;  %v501_v33 = vsub.f32 %v493_v55, %v497_v32  ;;  %v2071_v30 = vpack.c.bf16 %v990_v25, %v989_v24 }
 0x2ea   :  { %2186 = vpow2.f32 %v368_v31  ;;  %v643_v35 = vpop.xlane.xlu0 %642  ;;  %v992_v31 = vld [vmem:[%s2758_s9 + $0x18] sm:$0xff] }
 0x2eb   :  { %v503_v36 = vmul.f32 1.442695, %v501_v33  ;;  %v645_v40 = vsub.f32 %v637_v62, %v643_v35  ;;  %v2075_v32 = vpack.c.bf16 %v992_v31, %v991_v26  ;;  %v994_v33 = vld [vmem:[%s2758_s9 + $0x28] sm:$0xff]  ;;  %2072 = vmatprep.subr.bf16.mxu1 %v2071_v30 }
 0x2ec   :  { %v640_v34 = vpop.xlane.xlu1 %639  ;;  %2074 = vmatpush3.bf16.msra.mxu1 %v2071_v30 }
 0x2ed   :  { %2188 = vpow2.f32 %v503_v36  ;;  %v648_v42 = vmul.f32 1.442695, %v645_v40  ;;  %v644_v18 = vsub.f32 %v636_v1, %v640_v34  ;;  %2076 = vmatprep.subr.bf16.mxu1 %v2075_v32  ;;  %v995_v36 = vld [vmem:[%s2758_s9 + $0x30] sm:$0xff]  ;;  %v996_v40 = vld [vmem:[%s2758_s9 + $0x38] sm:$0xff] }
 0x2ee   :  { %v784_v46 = vpop.xlane.xlu0 %783  ;;  %v2083_v34 = vpack.c.bf16 %v996_v40, %v995_v36 }
 0x2ef   :  { %v2183_v48 = vpop.eup %2182  ;;  %2190 = vpow2.f32 %v648_v42  ;;  %v646_v49 = vmul.f32 1.442695, %v644_v18  ;;  %v786_v50 = vsub.f32 %v778_v13, %v784_v46  ;;  %v997_v42 = vld [vmem:[%s2758_s9 + $0x40] sm:$0xff]  ;;  %v998_v18 = vld [vmem:[%s2758_s9 + $0x48] sm:$0xff] }
 0x2f0   :  { %v781_v19 = vpop.xlane.xlu1 %780  ;;  %v375_v37 = vsel %vm359_vm6, %v2183_v48, 0.0  ;;  %2078 = vmatpush3.bf16.msra.mxu1 %v2075_v32  ;;  %v2087_v46 = vpack.c.bf16 %v998_v18, %v997_v42 }
 0x2f1   :  { %2192 = vpow2.f32 %v646_v49  ;;  %v789_v51 = vmul.f32 1.442695, %v786_v50  ;;  %v785_v52 = vsub.f32 %v777_v14, %v781_v19  ;;  %376 = vadd.xlane.f32.xlu0 %v375_v37  ;;  %v1000_v49 = vld [vmem:[%s2758_s9 + $0x58] sm:$0xff]  ;;  %v1001_v19 = vld [vmem:[%s2758_s9 + $0x60] sm:$0xff]  ;;  %v1002_v37 = vld [vmem:[%s2758_s9 + $0x68] sm:$0xff] }
 0x2f2   :  { %v2151_v53 = vpop.permute.xlu0 %2150 }
 0x2f3   :  { %v2185_v55 = vpop.eup %2184  ;;  %2194 = vpow2.f32 %v789_v51  ;;  %v787_v56 = vmul.f32 1.442695, %v785_v52  ;;  %v2153_v58 = vunpack.i.h.bf16 %v2151_v53  ;;  %v2152_v38 = vunpack.i.l.bf16 %v2151_v53  ;;  %v1003_v52 = vld [vmem:[%s2758_s9 + $0x70] sm:$0xff]  ;;  %v1004_v53 = vld [vmem:[%s2758_s9 + $0x78] sm:$0xff] }
 0x2f4   :  { %v2187_v59 = vpop.eup %2186  ;;  %v2156_v60 = vpop.permute.xlu1 %2155  ;;  %v510_v61 = vsel %vm359_vm6, %v2185_v55, 0.0  ;;  %v2095_v51 = vpack.c.bf16 %v1002_v37, %v1001_v19 }
 0x2f5   :  { %2196 = vpow2.f32 %v787_v56  ;;  %v2055_v62 = vpack.c.bf16 %v2153_v58, %v2152_v38  ;;  %1907 = vmatprep.mubr.msk.f32.mxu0 %vm359_vm6, %v2187_v59  ;;  %v2158_v63 = vunpack.i.h.bf16 %v2156_v60  ;;  %v2157_v0 = vunpack.i.l.bf16 %v2156_v60  ;;  %511 = vadd.xlane.f32.xlu1 %v510_v61 }
 0x2f6   :  { %1908 = vmatmul.mubr.msk.f32.vlgmr.msra.gmra.mrb[4].mxu0 %vm359_vm6, %v2183_v48  ;;  %v372_v3 = vsel %vm359_vm6, %v2187_v59, 0.0  ;;  %v999_v48 = vld [vmem:[%s2758_s9 + $0x50] sm:$0xff] }
 0x2f7   :  { %v2189_v1 = vpop.eup %2188  ;;  %2054 = vmatpush3.bf16.msra.mxu0 %v2534_v9  ;;  %v2059_v2 = vpack.c.bf16 %v2158_v63, %v2157_v0  ;;  %v2091_v50 = vpack.c.bf16 %v1000_v49, %v999_v48  ;;  %v1758_v49 = vld [vmem:[%s2756_s7] ss:$0 sm:$0xff] }
 0x2f8   :  { %2056 = vmatprep.subr.bf16.mxu0 %v2055_v62  ;;  %1914 = vmatprep.mubr.msk.f32.mxu0 %vm359_vm6, %v2189_v1  ;;  %v507_v4 = vsel %vm359_vm6, %v2189_v1, 0.0 }
 0x2f9   :  { %v2191_v5 = vpop.eup %2190  ;;  %373 = vadd.xlane.f32.xlu1 %v372_v3  ;;  %508 = vadd.xlane.f32.xlu0 %v507_v4 }
 0x2fa   :  { %1915 = vmatmul.mubr.msk.f32.vlgmr.msra.gmra.mrb[6].mxu0 %vm359_vm6, %v2185_v55  ;;  %v653_v9 = vsel %vm359_vm6, %v2191_v5, 0.0  ;;  %v2099_v55 = vpack.c.bf16 %v1004_v53, %v1003_v52 }
 0x2fb   :  { %v2193_v8 = vpop.eup %2192  ;;  %2058 = vmatpush3.bf16.msra.mxu0 %v2055_v62 }
 0x2fc   :  { %2060 = vmatprep.subr.bf16.mxu0 %v2059_v2  ;;  %1921 = vmatprep.mubr.msk.f32.mxu0 %vm359_vm6, %v2193_v8  ;;  %v650_v10 = vsel %vm359_vm6, %v2193_v8, 0.0 }
 0x2fd   :  { %v2195_v11 = vpop.eup %2194  ;;  %654 = vadd.xlane.f32.xlu1 %v653_v9  ;;  %651 = vadd.xlane.f32.xlu0 %v650_v10 }
 0x2fe   :  { %1922 = vmatmul.mubr.msk.f32.vlgmr.msra.gmra.mrb[8].mxu0 %vm359_vm6, %v2191_v5  ;;  %v794_v13 = vsel %vm359_vm6, %v2195_v11, 0.0 }
 0x2ff   :  { %v2197_v12 = vpop.eup %2196  ;;  %2062 = vmatpush3.bf16.msra.mxu0 %v2059_v2 }
 0x300   :  { %1928 = vmatprep.mubr.msk.f32.mxu0 %vm359_vm6, %v2197_v12  ;;  %v791_v14 = vsel %vm359_vm6, %v2197_v12, 0.0  ;;  %2064 = vmatprep.subr.bf16.mxu0 %v2063_v17 }
 0x301   :  { %795 = vadd.xlane.f32.xlu1 %v794_v13  ;;  %792 = vadd.xlane.f32.xlu0 %v791_v14 }
 0x302   :  { %1929 = vmatmul.mubr.msk.f32.vlgmr.msra.gmra.mrb[10].mxu0 %vm359_vm6, %v2195_v11 }
 0x303   :  { %2066 = vmatpush3.bf16.msra.mxu0 %v2063_v17 }
 0x304   :  { %2068 = vmatprep.subr.bf16.mxu0 %v2067_v23 }
 0x307   :  { %2070 = vmatpush3.bf16.msra.mxu0 %v2067_v23 }
 0x308   :  { %2103 = vmatprep.subr.bf16.mxu0 %v2300_v27  ;;  %v993_v27 = vld [vmem:[%s2758_s9 + $0x20] sm:$0xff] }
 0x309   :  { %v2079_v35 = vpack.c.bf16 %v994_v33, %v993_v27 }
 0x30b   :  { %2080 = vmatprep.subr.bf16.mxu1 %v2079_v35 }
 0x30c   :  { %2082 = vmatpush3.bf16.msra.mxu1 %v2079_v35 }
 0x30d   :  { %2084 = vmatprep.subr.bf16.mxu1 %v2083_v34 }
 0x310   :  { %2086 = vmatpush3.bf16.msra.mxu1 %v2083_v34 }
 0x311   :  { %2088 = vmatprep.subr.bf16.mxu1 %v2087_v46 }
 0x314   :  { %2090 = vmatpush3.bf16.msra.mxu1 %v2087_v46 }
 0x315   :  { %2092 = vmatprep.subr.bf16.mxu1 %v2091_v50 }
 0x318   :  { %2094 = vmatpush3.bf16.msra.mxu1 %v2091_v50 }
 0x319   :  { %2096 = vmatprep.subr.bf16.mxu1 %v2095_v51 }
 0x31c   :  { %2098 = vmatpush3.bf16.msra.mxu1 %v2095_v51 }
 0x31d   :  { %2100 = vmatprep.subr.bf16.mxu1 %v2099_v55 }
 0x320   :  { %2102 = vmatpush3.bf16.msra.mxu1 %v2099_v55 }
 0x37e   :  { %v377_v58 = vpop.xlane.xlu0 %376 }
 0x37f   :  { %v460_v60 = vmul.f32 4.0, %v377_v58 }
 0x381   :  { %2198 = vrcp.f32 %v460_v60  ;;  %v1080_v60 = vld [vmem:[%s2759_s10] sm:$0xf]  ;;  %s2646_s10 = sld [smem:[#allocation5]] }
 0x382   :  { %v512_v56 = vpop.xlane.xlu1 %511 }
 0x383   :  { %v603_v61 = vmul.f32 4.0, %v512_v56 }
 0x385   :  { %2200 = vrcp.f32 %v603_v61 }
 0x386   :  { %v374_v38 = vpop.xlane.xlu1 %373  ;;  %v509_v59 = vpop.xlane.xlu0 %508 }
 0x387   :  { %v602_v63 = vmul.f32 4.0, %v509_v59  ;;  %v459_v1 = vmul.f32 4.0, %v374_v38 }
 0x389   :  { %2202 = vrcp.f32 %v602_v63 }
 0x38a   :  { %v655_v62 = vpop.xlane.xlu1 %654  ;;  %v652_v0 = vpop.xlane.xlu0 %651  ;;  %2204 = vrcp.f32 %v459_v1 }
 0x38b   :  { %v744_v2 = vmul.f32 4.0, %v655_v62  ;;  %v743_v3 = vmul.f32 4.0, %v652_v0  ;;  %v2199_v12 = vpop.eup %2198  ;;  %v1168_v0 = vstv %s2646_s10 }
 0x38d   :  { %2206 = vrcp.f32 %v744_v2  ;;  %v1303_v2 = vstv %s2648_s21 }
 0x38e   :  { %v796_v4 = vpop.xlane.xlu1 %795  ;;  %v793_v5 = vpop.xlane.xlu0 %792  ;;  %2208 = vrcp.f32 %v743_v3 }
 0x38f   :  { %v885_v8 = vmul.f32 4.0, %v796_v4  ;;  %v884_v9 = vmul.f32 4.0, %v793_v5  ;;  %v2201_v13 = vpop.eup %2200  ;;  %v1305_v5 = vmul.f32 %v1303_v2, %v2473_v47 }
 0x391   :  { %2210 = vrcp.f32 %v885_v8 }
 0x392   :  { %2212 = vrcp.f32 %v884_v9 }
 0x393   :  { %v2203_v14 = vpop.eup %2202 }
 0x394   :  { %v2205_v16 = vpop.eup %2204 }
 0x397   :  { %v2207_v26 = vpop.eup %2206 }
 0x398   :  { %v2209_v32 = vpop.eup %2208 }
 0x39b   :  { %v2211_v40 = vpop.eup %2210 }
 0x39c   :  { %v2213_v18 = vpop.eup %2212 }
 0x3c9   :  { %v1909_v10 = vpop.f32.mrb[4].mxu0 }
 0x3ca   :  { %v450_v11 = vpop.f32.mrb[5].mxu0  ;;  %v464_v17 = vmul.f32 %v2199_v12, %v1909_v10 }
 0x3cb   :  { %v463_v23 = vmul.f32 %v2205_v16, %v450_v11 }
 0x3cd   :  { %v1916_v15 = vpop.f32.mrb[6].mxu0 }
 0x3ce   :  { %v607_v21 = vmul.f32 %v2201_v13, %v1916_v15  ;;  %v593_v22 = vpop.f32.mrb[7].mxu0 }
 0x3cf   :  { %v606_v24 = vmul.f32 %v2203_v14, %v593_v22 }
 0x3d0   :  { %v609_v25 = vadd.f32 %v607_v21, %v464_v17 }
 0x3d1   :  { %v608_v30 = vadd.f32 %v606_v24, %v463_v23  ;;  %v1923_v31 = vpop.f32.mrb[8].mxu0 }
 0x3d2   :  { %v748_v27 = vmul.f32 %v2207_v26, %v1923_v31  ;;  %v734_v33 = vpop.f32.mrb[9].mxu0 }
 0x3d3   :  { %v747_v35 = vmul.f32 %v2209_v32, %v734_v33 }
 0x3d4   :  { %v750_v36 = vadd.f32 %v748_v27, %v609_v25 }
 0x3d5   :  { %v749_v34 = vadd.f32 %v747_v35, %v608_v30  ;;  %v1930_v42 = vpop.f32.mrb[10].mxu0 }
 0x3d6   :  { %v889_v46 = vmul.f32 %v2211_v40, %v1930_v42  ;;  %v875_v48 = vpop.f32.mrb[11].mxu0 }
 0x3d7   :  { %v888_v50 = vmul.f32 %v2213_v18, %v875_v48 }
 0x3d8   :  { %v891_v19 = vadd.f32 %v889_v46, %v750_v36  ;;  %v1587_v46 = vstv %s2675_s23 }
 0x3d9   :  { %v890_v37 = vadd.f32 %v888_v50, %v749_v34 }
 0x3da   :  { %v900_v51 = vadd.f32 %v1758_v49, %v891_v19  ;;  %v1169_v19 = vmul.f32 %v1168_v0, %v2489_v54 }
 0x3db   :  { %v899_v52 = vadd.f32 %v1758_v49, %v890_v37 }
 0x3dc   :  { %v902_v55 = vmax.f32 %v900_v51, 0.0 }
 0x3dd   :  { %v901_v53 = vmax.f32 %v899_v52, 0.0  ;;  %v1588_v52 = vmul.f32 %v1587_v46, %v2489_v54 }
 0x3df   :  { %1939 = vmatprep.mubr.msk.f32.mxu0 %vm907_vm14, %v901_v53 }
 0x3e0   :  { %1940 = vmatmul.mubr.msk.f32.vlgmr.msra.gmra.mrb[12].mxu0 %vm907_vm14, %v902_v55 }
 0x3e1   :  { %1981 = vmatprep.mubr.msk.f32.mxu0 %vm2301_vm2, %v2302_v28 }
 0x4b3   :  { %v1941_v56 = vpop.f32.mrb[12].mxu0 }
 0x4b4   :  { %v980_v58 = vpop.f32.mrb[13].mxu0 }
 0x4b5   :  { %1974 = vmatprep.mubr.f32.mxu1 %v980_v58  ;;  %v2104_v38 = vpack.c.bf16 %v1941_v56, %v980_v58  ;;  %v2633_v59 = vpack.i.bf16 %v1941_v56, %v980_v58 }
 0x4b6   :  { %1975 = vmatmul.mubr.f32.vlgmr.msra.gmra.mrb[2].mxu1 %v1941_v56 }
 0x4b7   :  { %2105 = vmatpush3.bf16.xpose.msra.mxu0 %v2104_v38 }
 0x4b8   :  { %2107 = vmatprep.subr.bf16.mxu0 %v2104_v38 }
 0x4be   :  { %1982 = vmatmul.mubr.f32.vlgmr.msra.gmra.mrb[14].mxu0 %v1080_v60 }
 0x4bf   :  { %2109 = vmatpush3.bf16.msra.mxu0 %v2104_v38 }
 0x589   :  { %v1976_v61 = vpop.f32.mrb[2].mxu1 }
 0x58a   :  { %1158 = vperm.xlu1 %2160, %v1976_v61   ;;  %v1071_v62 = vpop.f32.mrb[3].mxu1 }
 0x58b   :  { %1153 = vperm.xlu0 %2159, %v1071_v62  }
 0x58e   :  { %2161 = vset.pattern.permute.xlu1 %v2303_v29 }
 0x58f   :  { %1293 = vperm.xlu1 %2161, %v1976_v61   ;;  %2181 = vset.pattern.permute.xlu0 %v2306_v41 }
 0x591   :  { %v2640_v28 = vpop.f32.mrb[14].mxu0 }
 0x592   :  { %v1983_v63 = vpop.f32.mrb[15].mxu0  ;;  %v1164_v1 = vrot.slane %v2640_v28, %v341_v45  ;;  %v1299_v3 = vrot.slane %v2640_v28, %v477_v44  ;;  %v1446_v45 = vstv %s2654_s22  ;;  %v1442_v11 = vrot.slane %v2640_v28, %v620_v57 }
 0x593   :  { %2162 = vset.pattern.permute.xlu1 %v2305_v39  ;;  %v1448_v15 = vmul.f32 %v1446_v45, %v2473_v47  ;;  %v1304_v57 = vmul.f32 %v1303_v2, %v2489_v54  ;;  %v1447_v35 = vmul.f32 %v1446_v45, %v2489_v54  ;;  %v1583_v51 = vrot.slane %v2640_v28, %v761_v7 }
 0x594   :  { %1436 = vperm.xlu1 %2162, %v1976_v61  }
 0x598   :  { %2163 = vset.pattern.permute.xlu1 %v2303_v29  ;;  %v1170_v29 = vmul.f32 %v1168_v0, %v2473_v47 }
 0x599   :  { %1289 = vperm.xlu1 %2163, %v1071_v62  }
 0x59d   :  { %2164 = vset.pattern.permute.xlu1 %v2305_v39 }
 0x59e   :  { %1432 = vperm.xlu1 %2164, %v1071_v62  }
 0x5a2   :  { %2165 = vset.pattern.permute.xlu1 %v2306_v41 }
 0x5a3   :  { %1573 = vperm.xlu1 %2165, %v1071_v62   ;;  %v1589_v62 = vmul.f32 %v1587_v46, %v2473_v47 }
 0x5a7   :  { %1577 = vperm.xlu1 %2165, %v1976_v61  }
 0x609   :  { %v1159_v39 = vpop.permute.xlu1 %1158 }
 0x60a   :  { %v1166_v41 = vadd.f32 %v1164_v1, %v1159_v39  ;;  %v1154_v42 = vpop.permute.xlu0 %1153 }
 0x60b   :  { %v1165_v37 = vadd.f32 %v1164_v1, %v1154_v42 }
 0x60c   :  { %v1172_v4 = vadd.f32 %v1170_v29, %v1166_v41 }
 0x60d   :  { %v1171_v60 = vadd.f32 %v1169_v19, %v1165_v37 }
 0x60e   :  { %v1176_v8 = vmul.f32 0.2, %v1172_v4  ;;  %v1294_v9 = vpop.permute.xlu1 %1293  ;;  %vm1174_vm15 = vcmp.gt.f32.partialorder %v1172_v4, 0.0 }
 0x60f   :  { %v1301_v10 = vadd.f32 %v1299_v3, %v1294_v9  ;;  %v1175_v28 = vmul.f32 0.2, %v1171_v60  ;;  %vm1173_vm5 = vcmp.gt.f32.partialorder %v1171_v60, 0.0 }
 0x610   :  { %v1178_v12 = vsel %vm1174_vm15, %v1172_v4, %v1176_v8 }
 0x611   :  { %v1307_v13 = vadd.f32 %v1305_v5, %v1301_v10  ;;  %v2667_v14 = vadd.f32 %v1178_v12, %v2503_v6 }
 0x613   :  { %v1311_v44 = vmul.f32 0.2, %v1307_v13  ;;  %v1437_v16 = vpop.permute.xlu1 %1436  ;;  %v1184_v17 = vsel %vm359_vm6, %v2667_v14, -inf  ;;  %vm1309_vm0 = vcmp.gt.f32.partialorder %v1307_v13, 0.0 }
 0x614   :  { %v1444_v21 = vadd.f32 %v1442_v11, %v1437_v16  ;;  %1185 = vmax.xlane.f32.xlu0 %v1184_v17 }
 0x615   :  { %v1313_v22 = vsel %vm1309_vm0, %v1307_v13, %v1311_v44 }
 0x616   :  { %v1450_v23 = vadd.f32 %v1448_v15, %v1444_v21  ;;  %v2673_v24 = vadd.f32 %v1313_v22, %v2503_v6 }
 0x618   :  { %v1454_v25 = vmul.f32 0.2, %v1450_v23  ;;  %v1290_v26 = vpop.permute.xlu1 %1289  ;;  %v1319_v30 = vsel %vm359_vm6, %v2673_v24, -inf  ;;  %vm1452_vm1 = vcmp.gt.f32.partialorder %v1450_v23, 0.0 }
 0x619   :  { %v1300_v31 = vadd.f32 %v1299_v3, %v1290_v26  ;;  %1320 = vmax.xlane.f32.xlu1 %v1319_v30  ;;  %v1177_v3 = vsel %vm1173_vm5, %v1171_v60, %v1175_v28 }
 0x61a   :  { %v1456_v32 = vsel %vm1452_vm1, %v1450_v23, %v1454_v25  ;;  %v1179_v8 = vadd.f32 %v1177_v3, %v2515_v20 }
 0x61b   :  { %v1306_v27 = vadd.f32 %v1304_v57, %v1300_v31  ;;  %v2681_v33 = vadd.f32 %v1456_v32, %v2503_v6 }
 0x61c   :  { %v1181_v9 = vsel %vm359_vm6, %v1179_v8, -inf }
 0x61d   :  { %v1310_v36 = vmul.f32 0.2, %v1306_v27  ;;  %v1433_v40 = vpop.permute.xlu1 %1432  ;;  %v1462_v34 = vsel %vm359_vm6, %v2681_v33, -inf  ;;  %vm1308_vm2 = vcmp.gt.f32.partialorder %v1306_v27, 0.0 }
 0x61e   :  { %v1443_v18 = vadd.f32 %v1442_v11, %v1433_v40  ;;  %1463 = vmax.xlane.f32.xlu1 %v1462_v34 }
 0x61f   :  { %v1312_v48 = vsel %vm1308_vm2, %v1306_v27, %v1310_v36 }
 0x620   :  { %v1449_v49 = vadd.f32 %v1447_v35, %v1443_v18  ;;  %v2688_v50 = vadd.f32 %v1312_v48, %v2515_v20 }
 0x622   :  { %v1453_v53 = vmul.f32 0.2, %v1449_v49  ;;  %v1574_v55 = vpop.permute.xlu1 %1573  ;;  %v1316_v56 = vsel %vm359_vm6, %v2688_v50, -inf  ;;  %vm1451_vm3 = vcmp.gt.f32.partialorder %v1449_v49, 0.0 }
 0x623   :  { %v1584_v58 = vadd.f32 %v1583_v51, %v1574_v55  ;;  %1317 = vmax.xlane.f32.xlu0 %v1316_v56 }
 0x624   :  { %v1455_v38 = vsel %vm1451_vm3, %v1449_v49, %v1453_v53 }
 0x625   :  { %v1590_v61 = vadd.f32 %v1588_v52, %v1584_v58  ;;  %v1457_v63 = vadd.f32 %v1455_v38, %v2515_v20 }
 0x626   :  { %v1578_v43 = vpop.permute.xlu1 %1577 }
 0x627   :  { %v1594_v0 = vmul.f32 0.2, %v1590_v61  ;;  %v1585_v7 = vadd.f32 %v1583_v51, %v1578_v43  ;;  %v1459_v54 = vsel %vm359_vm6, %v1457_v63, -inf  ;;  %vm1592_vm4 = vcmp.gt.f32.partialorder %v1590_v61, 0.0 }
 0x628   :  { %1460 = vmax.xlane.f32.xlu0 %v1459_v54 }
 0x629   :  { %v1591_v1 = vadd.f32 %v1589_v62, %v1585_v7  ;;  %v1596_v29 = vsel %vm1592_vm4, %v1590_v61, %v1594_v0 }
 0x62a   :  { %v1598_v39 = vadd.f32 %v1596_v29, %v2515_v20 }
 0x62b   :  { %v1595_v41 = vmul.f32 0.2, %v1591_v1  ;;  %vm1593_vm7 = vcmp.gt.f32.partialorder %v1591_v1, 0.0 }
 0x62c   :  { %v1600_v2 = vsel %vm359_vm6, %v1598_v39, -inf }
 0x62d   :  { %1601 = vmax.xlane.f32.xlu0 %v1600_v2  ;;  %v1597_v47 = vsel %vm1593_vm7, %v1591_v1, %v1595_v41 }
 0x62e   :  { %v1599_v4 = vadd.f32 %v1597_v47, %v2503_v6 }
 0x630   :  { %v1603_v5 = vsel %vm359_vm6, %v1599_v4, -inf }
 0x631   :  { %1604 = vmax.xlane.f32.xlu1 %v1603_v5 }
 0x635   :  { %1182 = vmax.xlane.f32.xlu1 %v1181_v9 }
 0x643   :  { %2167 = vrot.lane.b32.xlu0 %v2633_v59, %s2307_s5 }
 0x646   :  { %2172 = vrot.lane.b32.xlu1 %v2633_v59, %s2310_s2  ;;  %s2311_s2 = smov [#allocation7]  }
 0x647   :  { %s1731_s24 = sshll.u32 %s2311_s2, 4  ;;  %s1732_s24 = int_to_ptr.vmem [resolvable:$true] %s1731_s24 }
 0x648   :  { %s2270_s25 = scalar_lea.vmem %s1732_s24, 256  ;;  %p2275_p11 = scmp.lt.s32.totalorder %s1732_s24, %s1732_s24 }
 0x649   :  { %p2271_p10 = scmp.ne.s32.totalorder %s1732_s24, %s2270_s25  ;;  %p2276_p12 = scmp.lt.s32.totalorder %s2270_s25, %s2270_s25 }
 0x64a   :  { %2177 = vrot.lane.b32.xlu1 %v2633_v59, %s2309_s1 }
 0x64b   :  { %p2277_p13 = por %p2276_p12, %p2275_p11 }
 0x64d   :  { %p2278_p0 = pnand %p2277_p13, %p2271_p10 }
 0x6a1   :  { %v1186_v10 = vpop.xlane.xlu0 %1185 }
 0x6a2   :  { %v1188_v6 = vsub.f32 %v2667_v14, %v1186_v10 }
 0x6a4   :  { %v1191_v45 = vmul.f32 1.442695, %v1188_v6 }
 0x6a6   :  { %2214 = vpow2.f32 %v1191_v45  ;;  %v1321_v11 = vpop.xlane.xlu1 %1320 }
 0x6a7   :  { %v1323_v20 = vsub.f32 %v2673_v24, %v1321_v11 }
 0x6a9   :  { %v1326_v12 = vmul.f32 1.442695, %v1323_v20 }
 0x6ab   :  { %2216 = vpow2.f32 %v1326_v12  ;;  %v1464_v13 = vpop.xlane.xlu1 %1463 }
 0x6ac   :  { %v1466_v15 = vsub.f32 %v2681_v33, %v1464_v13 }
 0x6ae   :  { %v1469_v44 = vmul.f32 1.442695, %v1466_v15 }
 0x6b0   :  { %v2215_v16 = vpop.eup %2214  ;;  %2218 = vpow2.f32 %v1469_v44  ;;  %v1318_v17 = vpop.xlane.xlu0 %1317 }
 0x6b1   :  { %v1196_v21 = vsel %vm359_vm6, %v2215_v16, 0.0  ;;  %v1322_v36 = vsub.f32 %v2688_v50, %v1318_v17 }
 0x6b2   :  { %1197 = vadd.xlane.f32.xlu1 %v1196_v21 }
 0x6b3   :  { %v1324_v46 = vmul.f32 1.442695, %v1322_v36 }
 0x6b5   :  { %v2217_v59 = vpop.eup %2216  ;;  %v1461_v22 = vpop.xlane.xlu0 %1460 }
 0x6b6   :  { %v1465_v14 = vsub.f32 %v1457_v63, %v1461_v22  ;;  %v1331_v23 = vsel %vm359_vm6, %v2217_v59, 0.0 }
 0x6b7   :  { %1332 = vadd.xlane.f32.xlu0 %v1331_v23 }
 0x6b8   :  { %v1467_v57 = vmul.f32 1.442695, %v1465_v14 }
 0x6ba   :  { %v2219_v24 = vpop.eup %2218  ;;  %2220 = vpow2.f32 %v1467_v57  ;;  %v1602_v25 = vpop.xlane.xlu0 %1601 }
 0x6bb   :  { %v1606_v26 = vsub.f32 %v1598_v39, %v1602_v25  ;;  %v1474_v30 = vsel %vm359_vm6, %v2219_v24, 0.0 }
 0x6bc   :  { %1475 = vadd.xlane.f32.xlu0 %v1474_v30 }
 0x6bd   :  { %v1608_v31 = vmul.f32 1.442695, %v1606_v26 }
 0x6be   :  { %v1605_v32 = vpop.xlane.xlu1 %1604  ;;  %v2168_v27 = vpop.permute.xlu0 %2167 }
 0x6bf   :  { %2222 = vpow2.f32 %v1608_v31  ;;  %v2170_v33 = vunpack.i.h.bf16 %v2168_v27  ;;  %v2169_v35 = vunpack.i.l.bf16 %v2168_v27  ;;  %v1607_v48 = vsub.f32 %v1599_v4, %v1605_v32 }
 0x6c1   :  { %v2110_v40 = vpack.c.bf16 %v2170_v33, %v2169_v35  ;;  %v1610_v51 = vmul.f32 1.442695, %v1607_v48 }
 0x6c2   :  { %v1183_v34 = vpop.xlane.xlu1 %1182 }
 0x6c3   :  { %v1187_v42 = vsub.f32 %v1179_v8, %v1183_v34  ;;  %2111 = vmatprep.subr.bf16.mxu0 %v2110_v40 }
 0x6c4   :  { %v2221_v18 = vpop.eup %2220 }
 0x6c5   :  { %v1189_v49 = vmul.f32 1.442695, %v1187_v42  ;;  %v1471_v19 = vsel %vm359_vm6, %v2221_v18, 0.0 }
 0x6c6   :  { %1472 = vadd.xlane.f32.xlu1 %v1471_v19  ;;  %v2173_v52 = vpop.permute.xlu1 %2172 }
 0x6c7   :  { %2224 = vpow2.f32 %v1189_v49  ;;  %v2175_v50 = vunpack.i.h.bf16 %v2173_v52  ;;  %v2174_v55 = vunpack.i.l.bf16 %v2173_v52 }
 0x6c8   :  { %2226 = vpow2.f32 %v1324_v46  ;;  %v1772_v46 = vld [vmem:[%s2761_s12] ss:$0 sm:$0xff] }
 0x6c9   :  { %v2223_v37 = vpop.eup %2222  ;;  %2228 = vpow2.f32 %v1610_v51  ;;  %v2114_v61 = vpack.c.bf16 %v2175_v50, %v2174_v55 }
 0x6ca   :  { %v1612_v53 = vsel %vm359_vm6, %v2223_v37, 0.0  ;;  %v2178_v56 = vpop.permute.xlu1 %2177 }
 0x6cb   :  { %1613 = vadd.xlane.f32.xlu1 %v1612_v53  ;;  %v2180_v62 = vunpack.i.h.bf16 %v2178_v56  ;;  %v2179_v63 = vunpack.i.l.bf16 %v2178_v56 }
 0x6cd   :  { %v2118_v7 = vpack.c.bf16 %v2180_v62, %v2179_v63 }
 0x6d1   :  { %v2225_v58 = vpop.eup %2224 }
 0x6d2   :  { %1988 = vmatprep.mubr.msk.f32.mxu0 %vm359_vm6, %v2225_v58  ;;  %v1193_v38 = vsel %vm359_vm6, %v2225_v58, 0.0  ;;  %v2227_v60 = vpop.eup %2226 }
 0x6d3   :  { %1194 = vadd.xlane.f32.xlu0 %v1193_v38  ;;  %1989 = vmatmul.mubr.msk.f32.vlgmr.msra.gmra.mrb[16].mxu0 %vm359_vm6, %v2215_v16  ;;  %v1328_v43 = vsel %vm359_vm6, %v2227_v60, 0.0  ;;  %v2229_v0 = vpop.eup %2228 }
 0x6d4   :  { %2113 = vmatpush3.bf16.msra.mxu0 %v2110_v40  ;;  %1995 = vmatprep.mubr.msk.f32.mxu0 %vm359_vm6, %v2227_v60  ;;  %v1615_v54 = vsel %vm359_vm6, %v2229_v0, 0.0 }
 0x6d5   :  { %2115 = vmatprep.subr.bf16.mxu0 %v2114_v61 }
 0x6d7   :  { %1329 = vadd.xlane.f32.xlu0 %v1328_v43  ;;  %1996 = vmatmul.mubr.msk.f32.vlgmr.msra.gmra.mrb[18].mxu0 %vm359_vm6, %v2217_v59 }
 0x6d8   :  { %2117 = vmatpush3.bf16.msra.mxu0 %v2114_v61  ;;  %2002 = vmatprep.mubr.msk.f32.mxu0 %vm359_vm6, %v2221_v18 }
 0x6d9   :  { %2119 = vmatprep.subr.bf16.mxu0 %v2118_v7 }
 0x6db   :  { %1616 = vadd.xlane.f32.xlu0 %v1615_v54  ;;  %2003 = vmatmul.mubr.msk.f32.vlgmr.msra.gmra.mrb[20].mxu0 %vm359_vm6, %v2219_v24 }
 0x6dc   :  { %2121 = vmatpush3.bf16.msra.mxu0 %v2118_v7  ;;  %2009 = vmatprep.mubr.msk.f32.mxu0 %vm359_vm6, %v2223_v37 }
 0x6df   :  { %2010 = vmatmul.mubr.msk.f32.vlgmr.msra.gmra.mrb[22].mxu0 %vm359_vm6, %v2229_v0 }
 0x73f   :  { %v1198_v39 = vpop.xlane.xlu1 %1197 }
 0x740   :  { %v1281_v41 = vmul.f32 4.0, %v1198_v39 }
 0x742   :  { %2230 = vrcp.f32 %v1281_v41 }
 0x744   :  { %v1333_v28 = vpop.xlane.xlu0 %1332 }
 0x745   :  { %v1424_v47 = vmul.f32 4.0, %v1333_v28 }
 0x747   :  { %2232 = vrcp.f32 %v1424_v47 }
 0x749   :  { %v1476_v1 = vpop.xlane.xlu0 %1475 }
 0x74a   :  { %v1565_v8 = vmul.f32 4.0, %v1476_v1 }
 0x74c   :  { %v2231_v13 = vpop.eup %2230 }
 0x751   :  { %v2233_v15 = vpop.eup %2232 }
 0x753   :  { %v1473_v3 = vpop.xlane.xlu1 %1472 }
 0x754   :  { %v1564_v9 = vmul.f32 4.0, %v1473_v3 }
 0x758   :  { %v1614_v6 = vpop.xlane.xlu1 %1613 }
 0x759   :  { %v1705_v11 = vmul.f32 4.0, %v1614_v6 }
 0x760   :  { %v1195_v29 = vpop.xlane.xlu0 %1194 }
 0x761   :  { %v1280_v4 = vmul.f32 4.0, %v1195_v29 }
 0x763   :  { %2234 = vrcp.f32 %v1280_v4 }
 0x764   :  { %v1330_v2 = vpop.xlane.xlu0 %1329 }
 0x765   :  { %v1423_v5 = vmul.f32 4.0, %v1330_v2 }
 0x767   :  { %2236 = vrcp.f32 %v1423_v5 }
 0x768   :  { %v1617_v10 = vpop.xlane.xlu0 %1616  ;;  %2238 = vrcp.f32 %v1565_v8 }
 0x769   :  { %v1706_v45 = vmul.f32 4.0, %v1617_v10  ;;  %2240 = vrcp.f32 %v1564_v9 }
 0x76b   :  { %2242 = vrcp.f32 %v1706_v45 }
 0x76c   :  { %2244 = vrcp.f32 %v1705_v11 }
 0x76d   :  { %v2235_v44 = vpop.eup %2234 }
 0x771   :  { %v2237_v17 = vpop.eup %2236 }
 0x772   :  { %v2239_v24 = vpop.eup %2238 }
 0x773   :  { %v2241_v30 = vpop.eup %2240 }
 0x775   :  { %v2243_v35 = vpop.eup %2242 }
 0x776   :  { %v2245_v34 = vpop.eup %2244 }
 0x7a6   :  { %v1990_v20 = vpop.f32.mrb[16].mxu0 }
 0x7a7   :  { %v1271_v12 = vpop.f32.mrb[17].mxu0  ;;  %v1285_v21 = vmul.f32 %v2231_v13, %v1990_v20 }
 0x7a8   :  { %v1284_v14 = vmul.f32 %v2235_v44, %v1271_v12 }
 0x7aa   :  { %v1997_v16 = vpop.f32.mrb[18].mxu0 }
 0x7ab   :  { %v1428_v59 = vmul.f32 %v2233_v15, %v1997_v16  ;;  %v1414_v22 = vpop.f32.mrb[19].mxu0 }
 0x7ac   :  { %v1427_v23 = vmul.f32 %v2237_v17, %v1414_v22 }
 0x7ad   :  { %v1430_v57 = vadd.f32 %v1428_v59, %v1285_v21 }
 0x7ae   :  { %v1429_v25 = vadd.f32 %v1427_v23, %v1284_v14  ;;  %v2004_v26 = vpop.f32.mrb[20].mxu0 }
 0x7af   :  { %v1569_v31 = vmul.f32 %v2239_v24, %v2004_v26  ;;  %v1555_v32 = vpop.f32.mrb[21].mxu0 }
 0x7b0   :  { %v1568_v27 = vmul.f32 %v2241_v30, %v1555_v32 }
 0x7b1   :  { %v1571_v33 = vadd.f32 %v1569_v31, %v1430_v57 }
 0x7b2   :  { %v1570_v36 = vadd.f32 %v1568_v27, %v1429_v25  ;;  %v2011_v40 = vpop.f32.mrb[22].mxu0 }
 0x7b3   :  { %v1710_v42 = vmul.f32 %v2243_v35, %v2011_v40  ;;  %v1696_v18 = vpop.f32.mrb[23].mxu0 }
 0x7b4   :  { %v1709_v48 = vmul.f32 %v2245_v34, %v1696_v18 }
 0x7b5   :  { %v1712_v49 = vadd.f32 %v1710_v42, %v1571_v33 }
 0x7b6   :  { %v1711_v19 = vadd.f32 %v1709_v48, %v1570_v36 }
 0x7b7   :  { %v1721_v37 = vadd.f32 %v1772_v46, %v1712_v49 }
 0x7b8   :  { %v1720_v51 = vadd.f32 %v1772_v46, %v1711_v19 }
 0x7b9   :  { %v1723_v52 = vmax.f32 %v1721_v37, 0.0 }
 0x7ba   :  { %v1722_v53 = vmax.f32 %v1720_v51, 0.0 }
 0x7bb   :  { %1725 = vst.msk [vmem:[#allocation7 + $0x8] sm:$0xff] %vm907_vm14, %v1723_v52 }
 0x7bc   :  { %1724 = vst.msk [vmem:[#allocation7] sm:$0xff] %vm907_vm14, %v1722_v53 }
 0x7bd   :  { %2281 = shalt.err (!%p2278_p0)
}
 0x7be   :  { %s2282_s26 = scalar_lea.hbm %s2762_s13, 256 }
 0x7bf   :  { %p2283_p1 = scmp.ne.s32.totalorder %s2762_s13, %s2282_s26  ;;  %p2286_p2 = scmp.lt.u32.totalorder %s2282_s26, %s2762_s13 }
 0x7c1   :  { %p2288_p3 = pnand %p2286_p2, %p2283_p1 }
 0x7c3   :  { %2291 = shalt.err (!%p2288_p3)
}
 0x7c4   :  { %s2312_s30 = smov 128   ;;  %s2313_s4 = smov 8  }
 0x7c5   :  { %1737 = dma.vmem_to_hbm [thread:$0]  %s1732_s24, 256, %s2762_s13, [#allocation3], %s2312_s30, %s2312_s30, %s2313_s4  }
 0x7c6   :  { %2296 = dma.done.wait [#allocation3], 256  }
 0x7c7   :  { %2297 = vsyncadd [#allocation3], 4294967040 }
 0x7c8   :  { %1741 = vsyncpa [#allocation3], 1 }
 0x7c9   :  { %1742 = vsyncpa [#allocation4], 1 }
 0x7ca   :  { %1743 = vsyncpa [#allocation6], 1 }

</bundles_post_ra>
